<compile_context>
chip_gen: v5e
topology: v5e:2x2
jax: 0.10.0
libtpu: 0.0.40
codegen_flags: <defaults>
</compile_context>

<pallas_src>
import jax
import jax.numpy as jnp
from jax import lax
from jax.experimental import pallas as pl
from jax.experimental.pallas import tpu as pltpu


def make_sred_kernel(N_step, M, Ls, Hh, modulus):
    """One grid point == one batch block.  Whole step loop runs in-kernel."""

    def kernel(phi_ref, ar_ref, ai_ref, hs_ref,
               w1sr_ref, w1si_ref, w2_ref, b2_ref,
               sr_out, si_out, rho_out):
        # ---- loop-invariant loads / broadcasts hoisted out of the step loop ----
        w1sr = w1sr_ref[...]                     # (Ls, H)
        w1si = w1si_ref[...]                     # (Ls, H)
        w2b = w2_ref[...][None, :, :]            # (1, 1, H)
        b2 = b2_ref[...]                         # (1, 1)
        hs = hs_ref[...]                         # (Bt, M, H)   step-invariant MLP half
        a_r = ar_ref[...]                        # (Bt, M, Ls, Ls)  A = G - H (real)
        a_i = ai_ref[...]                        # (Bt, M, Ls, Ls)  A = G - H (imag)
        phi0 = phi_ref[...]                      # (Bt, Ls)

        def step_body(step, phi):
            sr = modulus * jnp.cos(phi)          # Re(modulus * exp(j*phi))
            si = modulus * jnp.sin(phi)          # Im(modulus * exp(j*phi))
            sr_out[step] = sr
            si_out[step] = si

            # ---- Estimate_rho, all M at once (only the s-dependent half of
            #      the first Linear is computed here; the rest is h_static) ----
            h_dyn = (jnp.dot(sr, w1sr, preferred_element_type=jnp.float32)
                     + jnp.dot(si, w1si, preferred_element_type=jnp.float32))  # (Bt, H)
            h = jnp.maximum(h_dyn[:, None, :] + hs, 0.0)                       # (Bt, M, H)
            logit = jnp.sum(h * w2b, axis=-1) + b2                             # (Bt, M)
            rho = 1.0 / (1.0 + jnp.exp(-logit))                                # sigmoid
            rho_out[step] = rho                  # one lane-dense (Bt, M) store per step

            # ---- eta_sred for all M via the phase-difference form ----
            # P_ij = Im(conj(s_i) s_j),  Q_ij = Re(conj(s_i) s_j)   (M-independent)
            P = sr[:, :, None] * si[:, None, :] - si[:, :, None] * sr[:, None, :]  # (Bt,Ls,Ls)
            Q = sr[:, :, None] * sr[:, None, :] + si[:, :, None] * si[:, None, :]  # (Bt,Ls,Ls)
            eta = 2.0 * jnp.sum(a_r * P[:, None, :, :] + a_i * Q[:, None, :, :],
                                axis=-1)                                       # (Bt, M, Ls)
            eta_net = jnp.sum(rho[:, :, None] * eta, axis=1)                   # (Bt, Ls)

            # NOTE: uses rho of the LAST m, exactly as the PyTorch loop does.
            rho_last = rho[:, M - 1:M]                                          # (Bt, 1)
            return phi - rho_last * eta_net

        phi_f = lax.fori_loop(0, N_step, step_body, phi0,
                              unroll=True if N_step <= 8 else False)
        sr_out[N_step] = modulus * jnp.cos(phi_f)
        si_out[N_step] = modulus * jnp.sin(phi_f)

    return kernel


def sred_vary_rho_forward(phi_batch, w_M_batch, y_M, G_M_batch, H_M_batch,
                          params, constants):
    """JAX/Pallas equivalent of SRED_vary_rho.forward."""
    M = constants["M"]
    Ls = constants["Nt"] * constants["N"]
    N_step = constants["N_step"]
    modulus = float(constants["modulus"])
    Lw = w_M_batch.shape[1]
    Ly = y_M.shape[0]
    B = phi_batch.shape[0]

    f32 = jnp.float32
    hp = lax.Precision.HIGHEST

    W1 = params["W1"].astype(f32)
    b1 = params["b1"].astype(f32)
    W2 = params["W2"].astype(f32)
    b2 = params["b2"].astype(f32)
    Hh = W1.shape[1]
    # split W1 along its input dimension to match the cat() feature order
    w1sr = W1[0:Ls]
    w1si = W1[Ls:2 * Ls]
    w1wr = W1[2 * Ls:2 * Ls + Lw]
    w1wi = W1[2 * Ls + Lw:2 * Ls + 2 * Lw]
    w1y = W1[2 * Ls + 2 * Lw:2 * Ls + 2 * Lw + Ly]

    phi = phi_batch.astype(f32)

    # ---- glue: A = G - H precomputed (halves HBM->VMEM traffic vs shipping G and H) ----
    A = G_M_batch - H_M_batch                                    # (B, Ls, Ls, M) complex
    ar = jnp.transpose(jnp.real(A), (0, 3, 1, 2)).astype(f32)    # (B, M, Ls, Ls)
    ai = jnp.transpose(jnp.imag(A), (0, 3, 1, 2)).astype(f32)

    # ---- glue: step-invariant half of the Estimate_rho MLP ----
    w_r = jnp.transpose(jnp.real(w_M_batch), (0, 2, 1)).astype(f32)   # (B, M, Lw)
    w_i = jnp.transpose(jnp.imag(w_M_batch), (0, 2, 1)).astype(f32)
    y_h = jnp.dot(jnp.transpose(y_M.astype(f32), (1, 0)), w1y, precision=hp)   # (M, H)
    h_static = (jnp.einsum('bml,lh->bmh', w_r, w1wr, precision=hp)
                + jnp.einsum('bml,lh->bmh', w_i, w1wi, precision=hp)
                + y_h[None, :, :]
                + b1[None, None, :]).astype(f32)                  # (B, M, H)

    w2_row = W2.reshape(1, Hh)
    b2_ = b2.reshape(1, 1)

    # ---- grid over the batch axis ----
    # (8,128) rule: the sublane block dim must be a multiple of 8 or the full dim.
    Bt = 8 if (B % 8 == 0) else B
    nb = B // Bt

    kernel = make_sred_kernel(N_step, M, Ls, Hh, modulus)

    in_specs = [
        pl.BlockSpec((Bt, Ls), lambda b: (b, 0)),                  # phi
        pl.BlockSpec((Bt, M, Ls, Ls), lambda b: (b, 0, 0, 0)),     # ar
        pl.BlockSpec((Bt, M, Ls, Ls), lambda b: (b, 0, 0, 0)),     # ai
        pl.BlockSpec((Bt, M, Hh), lambda b: (b, 0, 0)),            # h_static
        pl.BlockSpec((Ls, Hh), lambda b: (0, 0)),                  # w1sr
        pl.BlockSpec((Ls, Hh), lambda b: (0, 0)),                  # w1si
        pl.BlockSpec((1, Hh), lambda b: (0, 0)),                   # w2 row
        pl.BlockSpec((1, 1), lambda b: (0, 0)),                    # b2
    ]
    out_specs = (
        pl.BlockSpec((N_step + 1, Bt, Ls), lambda b: (0, b, 0)),   # s real (step-major)
        pl.BlockSpec((N_step + 1, Bt, Ls), lambda b: (0, b, 0)),   # s imag
        pl.BlockSpec((N_step, Bt, M), lambda b: (0, b, 0)),        # rho (step-major)
    )

    # scoped-VMEM sizing: double-buffered per-block working set + weights + slack.
    blk_bytes = 4 * (Bt * Ls + 2 * Bt * M * Ls * Ls + Bt * M * Hh
                     + 2 * (N_step + 1) * Bt * Ls + N_step * Bt * M)
    w_bytes = 4 * (2 * Ls * Hh + 2 * Hh + 1)
    vmem_limit = int(min(max(2 * (blk_bytes + w_bytes) + (4 << 20), 32 << 20), 64 << 20))

    sr_stack, si_stack, rho_stack = pl.pallas_call(
        kernel,
        grid=(nb,),
        out_shape=(
            jax.ShapeDtypeStruct((N_step + 1, B, Ls), f32),
            jax.ShapeDtypeStruct((N_step + 1, B, Ls), f32),
            jax.ShapeDtypeStruct((N_step, B, M), f32),
        ),
        in_specs=in_specs,
        out_specs=out_specs,
        compiler_params=pltpu.CompilerParams(
            dimension_semantics=("parallel",),
            vmem_limit_bytes=vmem_limit),
    )(phi, ar, ai, h_static, w1sr, w1si, w2_row, b2_)

    # ---- glue: back to PyTorch output conventions ----
    s_stack_batch = lax.complex(
        jnp.transpose(sr_stack, (1, 0, 2)),
        jnp.transpose(si_stack, (1, 0, 2))).astype(jnp.complex64)
    rho_M_stack_batch = jnp.transpose(rho_stack, (1, 0, 2)).astype(f32)

    return {"s_stack_batch": s_stack_batch,
            "rho_M_stack_batch": rho_M_stack_batch}


def sred_reference(phi_batch, w_M_batch, y_M, G_M_batch, H_M_batch, params, constants):
    """Pure-JAX reference mirroring the PyTorch loop (incl. the last-m rho)."""
    M = constants["M"]
    Ls = constants["Nt"] * constants["N"]
    N_step = constants["N_step"]
    modulus = float(constants["modulus"])
    B = phi_batch.shape[0]
    hp = lax.Precision.HIGHEST
    W1, b1, W2, b2 = (params["W1"], params["b1"], params["W2"], params["b2"])

    phi = phi_batch.astype(jnp.float32)
    s_list, rho_steps = [], []
    for _ in range(N_step):
        s = modulus * jnp.exp(1j * phi)
        s_list.append(s)
        eta_net = jnp.zeros((B, Ls), jnp.float32)
        rho = None
        rho_m = []
        for m in range(M):
            w = w_M_batch[:, :, m]
            yb = jnp.broadcast_to(y_M[:, m][None, :], (B, y_M.shape[0])).astype(jnp.float32)
            x = jnp.concatenate([jnp.real(s), jnp.imag(s),
                                 jnp.real(w), jnp.imag(w), yb], axis=1)
            h = jnp.maximum(jnp.dot(x, W1, precision=hp) + b1, 0.0)
            logit = jnp.dot(h, W2, precision=hp) + b2
            rho = 1.0 / (1.0 + jnp.exp(-logit))                     # (B, 1)
            A = G_M_batch[:, :, :, m] - H_M_batch[:, :, :, m]
            u = jnp.einsum('bij,bj->bi', A, s, precision=hp)
            eta = 2.0 * jnp.imag(jnp.conj(s) * u)
            eta_net = eta_net + rho * eta.astype(jnp.float32)
            rho_m.append(rho[:, 0])
        phi = phi - rho * eta_net
        rho_steps.append(jnp.stack(rho_m, axis=1))                  # (B, M)
    s_list.append(modulus * jnp.exp(1j * phi))
    return {"s_stack_batch": jnp.stack(s_list, axis=1).astype(jnp.complex64),
            "rho_M_stack_batch": jnp.stack(rho_steps, axis=1)}


def init_params(key, d_in, hidden):
    """Deterministic init of the Estimate_rho MLP parameters."""
    k1, k2, k3, k4 = jax.random.split(key, 4)
    s1 = 1.0 / jnp.sqrt(d_in)
    s2 = 1.0 / jnp.sqrt(hidden)
    return {
        "W1": jax.random.uniform(k1, (d_in, hidden), jnp.float32, -s1, s1),
        "b1": jax.random.uniform(k2, (hidden,), jnp.float32, -s1, s1),
        "W2": jax.random.uniform(k3, (hidden, 1), jnp.float32, -s2, s2),
        "b2": jax.random.uniform(k4, (1,), jnp.float32, -s2, s2),
    }


if __name__ == "__main__":
    # small, module-consistent shapes
    constants = {"M": 3, "Nt": 2, "N": 4, "N_step": 2, "modulus": 1.0,
                 "Lw": 4, "Ly": 6}
    B = 2
    M = constants["M"]
    Ls = constants["Nt"] * constants["N"]
    Lw, Ly, N_step = constants["Lw"], constants["Ly"], constants["N_step"]
    hidden = 16
    d_in = 2 * Ls + 2 * Lw + Ly

    key = jax.random.PRNGKey(0)
    keys = jax.random.split(key, 10)

    phi_batch = jax.random.uniform(keys[0], (B, Ls), jnp.float32, -jnp.pi, jnp.pi)
    w_M_batch = (jax.random.normal(keys[1], (B, Lw, M), jnp.float32)
                 + 1j * jax.random.normal(keys[2], (B, Lw, M), jnp.float32)
                 ).astype(jnp.complex64)
    y_M = jax.random.normal(keys[3], (Ly, M), jnp.float32)
    G_M_batch = ((jax.random.normal(keys[4], (B, Ls, Ls, M), jnp.float32)
                  + 1j * jax.random.normal(keys[5], (B, Ls, Ls, M), jnp.float32))
                 * 0.1).astype(jnp.complex64)
    H_M_batch = ((jax.random.normal(keys[6], (B, Ls, Ls, M), jnp.float32)
                  + 1j * jax.random.normal(keys[7], (B, Ls, Ls, M), jnp.float32))
                 * 0.1).astype(jnp.complex64)

    params = init_params(keys[8], d_in, hidden)

    outputs = sred_vary_rho_forward(phi_batch, w_M_batch, y_M,
                                    G_M_batch, H_M_batch, params, constants)
    s_stack = jax.block_until_ready(outputs["s_stack_batch"])
    rho_stack = jax.block_until_ready(outputs["rho_M_stack_batch"])

    assert s_stack.shape == (B, N_step + 1, Ls) and s_stack.dtype == jnp.complex64
    assert rho_stack.shape == (B, N_step, M) and rho_stack.dtype == jnp.float32
    assert bool(jnp.all(jnp.isfinite(jnp.real(s_stack))))
    assert bool(jnp.all(jnp.isfinite(rho_stack)))
    # unit-modulus check: |s| == modulus everywhere
    assert bool(jnp.allclose(jnp.abs(s_stack), constants["modulus"], atol=1e-4))

    # cross-check against a pure-JAX reference of the same forward pass
    ref = sred_reference(phi_batch, w_M_batch, y_M, G_M_batch, H_M_batch,
                         params, constants)
    assert bool(jnp.allclose(s_stack, ref["s_stack_batch"], rtol=2e-3, atol=2e-3))
    assert bool(jnp.allclose(rho_stack, ref["rho_M_stack_batch"], rtol=2e-3, atol=2e-3))

    print("KERNEL_OK")
</pallas_src>

<mosaic_0001>
module attributes {stable_mosaic.version = 11 : i64} {
  func.func @kernel(%arg0: i32, %arg1: memref<2x8xf32, #tpu.memory_space<vmem>>, %arg2: memref<2x3x8x8xf32, #tpu.memory_space<vmem>>, %arg3: memref<2x3x8x8xf32, #tpu.memory_space<vmem>>, %arg4: memref<2x3x16xf32, #tpu.memory_space<vmem>>, %arg5: memref<8x16xf32, #tpu.memory_space<vmem>>, %arg6: memref<8x16xf32, #tpu.memory_space<vmem>>, %arg7: memref<1x16xf32, #tpu.memory_space<vmem>>, %arg8: memref<1x1xf32, #tpu.memory_space<vmem>>, %arg9: memref<3x2x8xf32, #tpu.memory_space<vmem>>, %arg10: memref<3x2x8xf32, #tpu.memory_space<vmem>>, %arg11: memref<2x2x3xf32, #tpu.memory_space<vmem>>) attributes {dimension_semantics = [#tpu.dimension_semantics<parallel>], iteration_bounds = array<i64: 1>, scalar_prefetch = 0 : i64, scratch_operands = 0 : i64, tpu.core_type = #tpu.core_type<tc>, window_params = [{transform_indices = @transform_0, window_bounds = array<i64: 2, 8>}, {transform_indices = @transform_1, window_bounds = array<i64: 2, 3, 8, 8>}, {transform_indices = @transform_2, window_bounds = array<i64: 2, 3, 8, 8>}, {transform_indices = @transform_3, window_bounds = array<i64: 2, 3, 16>}, {pipeline_mode = #tpu.pipeline_mode<synchronous>, transform_indices = @transform_4, window_bounds = array<i64: 8, 16>}, {pipeline_mode = #tpu.pipeline_mode<synchronous>, transform_indices = @transform_5, window_bounds = array<i64: 8, 16>}, {pipeline_mode = #tpu.pipeline_mode<synchronous>, transform_indices = @transform_6, window_bounds = array<i64: 1, 16>}, {pipeline_mode = #tpu.pipeline_mode<synchronous>, transform_indices = @transform_7, window_bounds = array<i64: 1, 1>}, {transform_indices = @transform_8, window_bounds = array<i64: 3, 2, 8>}, {transform_indices = @transform_9, window_bounds = array<i64: 3, 2, 8>}, {transform_indices = @transform_10, window_bounds = array<i64: 2, 2, 3>}]} {
    %c0 = arith.constant 0 : index
    %c0_0 = arith.constant 0 : index
    %0 = vector.load %arg5[%c0, %c0_0] : memref<8x16xf32, #tpu.memory_space<vmem>>, vector<8x16xf32>
    %c0_1 = arith.constant 0 : index
    %c0_2 = arith.constant 0 : index
    %1 = vector.load %arg6[%c0_1, %c0_2] : memref<8x16xf32, #tpu.memory_space<vmem>>, vector<8x16xf32>
    %c0_3 = arith.constant 0 : index
    %c0_4 = arith.constant 0 : index
    %2 = vector.load %arg7[%c0_3, %c0_4] : memref<1x16xf32, #tpu.memory_space<vmem>>, vector<1x16xf32>
    %3 = vector.shape_cast %2 : vector<1x16xf32> to vector<1x1x16xf32>
    %c0_5 = arith.constant 0 : index
    %c0_6 = arith.constant 0 : index
    %4 = vector.load %arg8[%c0_5, %c0_6] : memref<1x1xf32, #tpu.memory_space<vmem>>, vector<1x1xf32>
    %c0_7 = arith.constant 0 : index
    %c0_8 = arith.constant 0 : index
    %c0_9 = arith.constant 0 : index
    %5 = vector.load %arg4[%c0_7, %c0_8, %c0_9] : memref<2x3x16xf32, #tpu.memory_space<vmem>>, vector<2x3x16xf32>
    %c0_10 = arith.constant 0 : index
    %c0_11 = arith.constant 0 : index
    %c0_12 = arith.constant 0 : index
    %c0_13 = arith.constant 0 : index
    %6 = vector.load %arg2[%c0_10, %c0_11, %c0_12, %c0_13] : memref<2x3x8x8xf32, #tpu.memory_space<vmem>>, vector<2x3x8x8xf32>
    %c0_14 = arith.constant 0 : index
    %c0_15 = arith.constant 0 : index
    %c0_16 = arith.constant 0 : index
    %c0_17 = arith.constant 0 : index
    %7 = vector.load %arg3[%c0_14, %c0_15, %c0_16, %c0_17] : memref<2x3x8x8xf32, #tpu.memory_space<vmem>>, vector<2x3x8x8xf32>
    %c0_18 = arith.constant 0 : index
    %c0_19 = arith.constant 0 : index
    %8 = vector.load %arg1[%c0_18, %c0_19] : memref<2x8xf32, #tpu.memory_space<vmem>>, vector<2x8xf32>
    %c0_i32 = arith.constant 0 : i32
    %9 = math.cos %8 : vector<2x8xf32>
    %cst = arith.constant 1.000000e+00 : f32
    %10 = vector.broadcast %cst : f32 to vector<2x8xf32>
    %11 = arith.mulf %10, %9 : vector<2x8xf32>
    %12 = math.sin %8 : vector<2x8xf32>
    %cst_20 = arith.constant 1.000000e+00 : f32
    %13 = vector.broadcast %cst_20 : f32 to vector<2x8xf32>
    %14 = arith.mulf %13, %12 : vector<2x8xf32>
    %15 = arith.index_cast %c0_i32 : i32 to index
    %c0_21 = arith.constant 0 : index
    %c0_22 = arith.constant 0 : index
    %16 = vector.load %arg9[%15, %c0_21, %c0_22] : memref<3x2x8xf32, #tpu.memory_space<vmem>>, vector<1x2x8xf32>
    %17 = vector.shape_cast %16 : vector<1x2x8xf32> to vector<2x8xf32>
    %18 = vector.shape_cast %11 : vector<2x8xf32> to vector<1x2x8xf32>
    tpu.vector_store %arg9[%15, %c0_21, %c0_22], %18 {strides = array<i32>} : memref<3x2x8xf32, #tpu.memory_space<vmem>>, vector<1x2x8xf32>,
    %19 = arith.index_cast %c0_i32 : i32 to index
    %c0_23 = arith.constant 0 : index
    %c0_24 = arith.constant 0 : index
    %20 = vector.load %arg10[%19, %c0_23, %c0_24] : memref<3x2x8xf32, #tpu.memory_space<vmem>>, vector<1x2x8xf32>
    %21 = vector.shape_cast %20 : vector<1x2x8xf32> to vector<2x8xf32>
    %22 = vector.shape_cast %14 : vector<2x8xf32> to vector<1x2x8xf32>
    tpu.vector_store %arg10[%19, %c0_23, %c0_24], %22 {strides = array<i32>} : memref<3x2x8xf32, #tpu.memory_space<vmem>>, vector<1x2x8xf32>,
    %cst_25 = arith.constant dense<0.000000e+00> : vector<2x16xf32>
    %23 = tpu.matmul %11, %0, %cst_25 {dimension_numbers = #tpu.dot_dimension_numbers<[1], [0], [0], [1], [0, 0, 1, 1], [], []>} : vector<2x8xf32>, vector<8x16xf32>, vector<2x16xf32> -> vector<2x16xf32>
    %cst_26 = arith.constant dense<0.000000e+00> : vector<2x16xf32>
    %24 = tpu.matmul %14, %1, %cst_26 {dimension_numbers = #tpu.dot_dimension_numbers<[1], [0], [0], [1], [0, 0, 1, 1], [], []>} : vector<2x8xf32>, vector<8x16xf32>, vector<2x16xf32> -> vector<2x16xf32>
    %25 = arith.addf %23, %24 : vector<2x16xf32>
    %26 = vector.shape_cast %25 : vector<2x16xf32> to vector<2x1x16xf32>
    %27 = vector.broadcast %26 : vector<2x1x16xf32> to vector<2x3x16xf32>
    %28 = arith.addf %27, %5 : vector<2x3x16xf32>
    %cst_27 = arith.constant 0.000000e+00 : f32
    %29 = vector.broadcast %cst_27 : f32 to vector<2x3x16xf32>
    %30 = arith.maximumf %28, %29 : vector<2x3x16xf32>
    %31 = vector.broadcast %3 : vector<1x1x16xf32> to vector<2x3x16xf32>
    %32 = arith.mulf %30, %31 : vector<2x3x16xf32>
    %cst_28 = arith.constant dense<0.000000e+00> : vector<2x3xf32>
    %33 = vector.multi_reduction <add>, %32, %cst_28 [2] : vector<2x3x16xf32> to vector<2x3xf32>
    %34 = vector.broadcast %4 : vector<1x1xf32> to vector<2x3xf32>
    %35 = arith.addf %33, %34 : vector<2x3xf32>
    %cst_29 = arith.constant 0.000000e+00 : f32
    %36 = vector.broadcast %cst_29 : f32 to vector<2x3xf32>
    %37 = arith.subf %36, %35 : vector<2x3xf32>
    %38 = math.exp %37 : vector<2x3xf32>
    %cst_30 = arith.constant 1.000000e+00 : f32
    %39 = vector.broadcast %cst_30 : f32 to vector<2x3xf32>
    %40 = arith.addf %39, %38 : vector<2x3xf32>
    %cst_31 = arith.constant 1.000000e+00 : f32
    %41 = vector.broadcast %cst_31 : f32 to vector<2x3xf32>
    %42 = arith.divf %41, %40 : vector<2x3xf32>
    %43 = arith.index_cast %c0_i32 : i32 to index
    %c0_32 = arith.constant 0 : index
    %c0_33 = arith.constant 0 : index
    %44 = vector.load %arg11[%43, %c0_32, %c0_33] : memref<2x2x3xf32, #tpu.memory_space<vmem>>, vector<1x2x3xf32>
    %45 = vector.shape_cast %44 : vector<1x2x3xf32> to vector<2x3xf32>
    %46 = vector.shape_cast %42 : vector<2x3xf32> to vector<1x2x3xf32>
    tpu.vector_store %arg11[%43, %c0_32, %c0_33], %46 {strides = array<i32>} : memref<2x2x3xf32, #tpu.memory_space<vmem>>, vector<1x2x3xf32>,
    %47 = vector.shape_cast %11 : vector<2x8xf32> to vector<2x8x1xf32>
    %48 = vector.shape_cast %14 : vector<2x8xf32> to vector<2x1x8xf32>
    %49 = vector.broadcast %47 : vector<2x8x1xf32> to vector<2x8x8xf32>
    %50 = vector.broadcast %48 : vector<2x1x8xf32> to vector<2x8x8xf32>
    %51 = arith.mulf %49, %50 : vector<2x8x8xf32>
    %52 = vector.shape_cast %14 : vector<2x8xf32> to vector<2x8x1xf32>
    %53 = vector.shape_cast %11 : vector<2x8xf32> to vector<2x1x8xf32>
    %54 = vector.broadcast %52 : vector<2x8x1xf32> to vector<2x8x8xf32>
    %55 = vector.broadcast %53 : vector<2x1x8xf32> to vector<2x8x8xf32>
    %56 = arith.mulf %54, %55 : vector<2x8x8xf32>
    %57 = arith.subf %51, %56 : vector<2x8x8xf32>
    %58 = vector.shape_cast %11 : vector<2x8xf32> to vector<2x8x1xf32>
    %59 = vector.shape_cast %11 : vector<2x8xf32> to vector<2x1x8xf32>
    %60 = vector.broadcast %58 : vector<2x8x1xf32> to vector<2x8x8xf32>
    %61 = vector.broadcast %59 : vector<2x1x8xf32> to vector<2x8x8xf32>
    %62 = arith.mulf %60, %61 : vector<2x8x8xf32>
    %63 = vector.shape_cast %14 : vector<2x8xf32> to vector<2x8x1xf32>
    %64 = vector.shape_cast %14 : vector<2x8xf32> to vector<2x1x8xf32>
    %65 = vector.broadcast %63 : vector<2x8x1xf32> to vector<2x8x8xf32>
    %66 = vector.broadcast %64 : vector<2x1x8xf32> to vector<2x8x8xf32>
    %67 = arith.mulf %65, %66 : vector<2x8x8xf32>
    %68 = arith.addf %62, %67 : vector<2x8x8xf32>
    %69 = vector.shape_cast %57 : vector<2x8x8xf32> to vector<2x1x8x8xf32>
    %70 = vector.broadcast %69 : vector<2x1x8x8xf32> to vector<2x3x8x8xf32>
    %71 = arith.mulf %6, %70 : vector<2x3x8x8xf32>
    %72 = vector.shape_cast %68 : vector<2x8x8xf32> to vector<2x1x8x8xf32>
    %73 = vector.broadcast %72 : vector<2x1x8x8xf32> to vector<2x3x8x8xf32>
    %74 = arith.mulf %7, %73 : vector<2x3x8x8xf32>
    %75 = arith.addf %71, %74 : vector<2x3x8x8xf32>
    %cst_34 = arith.constant dense<0.000000e+00> : vector<2x3x8xf32>
    %76 = vector.multi_reduction <add>, %75, %cst_34 [3] : vector<2x3x8x8xf32> to vector<2x3x8xf32>
    %cst_35 = arith.constant 2.000000e+00 : f32
    %77 = vector.broadcast %cst_35 : f32 to vector<2x3x8xf32>
    %78 = arith.mulf %77, %76 : vector<2x3x8xf32>
    %79 = vector.shape_cast %42 : vector<2x3xf32> to vector<2x3x1xf32>
    %80 = vector.broadcast %79 : vector<2x3x1xf32> to vector<2x3x8xf32>
    %81 = arith.mulf %80, %78 : vector<2x3x8xf32>
    %cst_36 = arith.constant dense<0.000000e+00> : vector<2x8xf32>
    %82 = vector.multi_reduction <add>, %81, %cst_36 [1] : vector<2x3x8xf32> to vector<2x8xf32>
    %83 = vector.extract_strided_slice %42 {offsets = [0, 2], sizes = [2, 1], strides = [1, 1]} : vector<2x3xf32> to vector<2x1xf32>
    %84 = vector.broadcast %83 : vector<2x1xf32> to vector<2x8xf32>
    %85 = arith.mulf %84, %82 : vector<2x8xf32>
    %86 = arith.subf %8, %85 : vector<2x8xf32>
    %c1_i32 = arith.constant 1 : i32
    %87 = math.cos %86 : vector<2x8xf32>
    %cst_37 = arith.constant 1.000000e+00 : f32
    %88 = vector.broadcast %cst_37 : f32 to vector<2x8xf32>
    %89 = arith.mulf %88, %87 : vector<2x8xf32>
    %90 = math.sin %86 : vector<2x8xf32>
    %cst_38 = arith.constant 1.000000e+00 : f32
    %91 = vector.broadcast %cst_38 : f32 to vector<2x8xf32>
    %92 = arith.mulf %91, %90 : vector<2x8xf32>
    %93 = arith.index_cast %c1_i32 : i32 to index
    %c0_39 = arith.constant 0 : index
    %c0_40 = arith.constant 0 : index
    %94 = vector.load %arg9[%93, %c0_39, %c0_40] : memref<3x2x8xf32, #tpu.memory_space<vmem>>, vector<1x2x8xf32>
    %95 = vector.shape_cast %94 : vector<1x2x8xf32> to vector<2x8xf32>
    %96 = vector.shape_cast %89 : vector<2x8xf32> to vector<1x2x8xf32>
    tpu.vector_store %arg9[%93, %c0_39, %c0_40], %96 {strides = array<i32>} : memref<3x2x8xf32, #tpu.memory_space<vmem>>, vector<1x2x8xf32>,
    %97 = arith.index_cast %c1_i32 : i32 to index
    %c0_41 = arith.constant 0 : index
    %c0_42 = arith.constant 0 : index
    %98 = vector.load %arg10[%97, %c0_41, %c0_42] : memref<3x2x8xf32, #tpu.memory_space<vmem>>, vector<1x2x8xf32>
    %99 = vector.shape_cast %98 : vector<1x2x8xf32> to vector<2x8xf32>
    %100 = vector.shape_cast %92 : vector<2x8xf32> to vector<1x2x8xf32>
    tpu.vector_store %arg10[%97, %c0_41, %c0_42], %100 {strides = array<i32>} : memref<3x2x8xf32, #tpu.memory_space<vmem>>, vector<1x2x8xf32>,
    %cst_43 = arith.constant dense<0.000000e+00> : vector<2x16xf32>
    %101 = tpu.matmul %89, %0, %cst_43 {dimension_numbers = #tpu.dot_dimension_numbers<[1], [0], [0], [1], [0, 0, 1, 1], [], []>} : vector<2x8xf32>, vector<8x16xf32>, vector<2x16xf32> -> vector<2x16xf32>
    %cst_44 = arith.constant dense<0.000000e+00> : vector<2x16xf32>
    %102 = tpu.matmul %92, %1, %cst_44 {dimension_numbers = #tpu.dot_dimension_numbers<[1], [0], [0], [1], [0, 0, 1, 1], [], []>} : vector<2x8xf32>, vector<8x16xf32>, vector<2x16xf32> -> vector<2x16xf32>
    %103 = arith.addf %101, %102 : vector<2x16xf32>
    %104 = vector.shape_cast %103 : vector<2x16xf32> to vector<2x1x16xf32>
    %105 = vector.broadcast %104 : vector<2x1x16xf32> to vector<2x3x16xf32>
    %106 = arith.addf %105, %5 : vector<2x3x16xf32>
    %cst_45 = arith.constant 0.000000e+00 : f32
    %107 = vector.broadcast %cst_45 : f32 to vector<2x3x16xf32>
    %108 = arith.maximumf %106, %107 : vector<2x3x16xf32>
    %109 = vector.broadcast %3 : vector<1x1x16xf32> to vector<2x3x16xf32>
    %110 = arith.mulf %108, %109 : vector<2x3x16xf32>
    %cst_46 = arith.constant dense<0.000000e+00> : vector<2x3xf32>
    %111 = vector.multi_reduction <add>, %110, %cst_46 [2] : vector<2x3x16xf32> to vector<2x3xf32>
    %112 = vector.broadcast %4 : vector<1x1xf32> to vector<2x3xf32>
    %113 = arith.addf %111, %112 : vector<2x3xf32>
    %cst_47 = arith.constant 0.000000e+00 : f32
    %114 = vector.broadcast %cst_47 : f32 to vector<2x3xf32>
    %115 = arith.subf %114, %113 : vector<2x3xf32>
    %116 = math.exp %115 : vector<2x3xf32>
    %cst_48 = arith.constant 1.000000e+00 : f32
    %117 = vector.broadcast %cst_48 : f32 to vector<2x3xf32>
    %118 = arith.addf %117, %116 : vector<2x3xf32>
    %cst_49 = arith.constant 1.000000e+00 : f32
    %119 = vector.broadcast %cst_49 : f32 to vector<2x3xf32>
    %120 = arith.divf %119, %118 : vector<2x3xf32>
    %121 = arith.index_cast %c1_i32 : i32 to index
    %c0_50 = arith.constant 0 : index
    %c0_51 = arith.constant 0 : index
    %122 = vector.load %arg11[%121, %c0_50, %c0_51] : memref<2x2x3xf32, #tpu.memory_space<vmem>>, vector<1x2x3xf32>
    %123 = vector.shape_cast %122 : vector<1x2x3xf32> to vector<2x3xf32>
    %124 = vector.shape_cast %120 : vector<2x3xf32> to vector<1x2x3xf32>
    tpu.vector_store %arg11[%121, %c0_50, %c0_51], %124 {strides = array<i32>} : memref<2x2x3xf32, #tpu.memory_space<vmem>>, vector<1x2x3xf32>,
    %125 = vector.shape_cast %89 : vector<2x8xf32> to vector<2x8x1xf32>
    %126 = vector.shape_cast %92 : vector<2x8xf32> to vector<2x1x8xf32>
    %127 = vector.broadcast %125 : vector<2x8x1xf32> to vector<2x8x8xf32>
    %128 = vector.broadcast %126 : vector<2x1x8xf32> to vector<2x8x8xf32>
    %129 = arith.mulf %127, %128 : vector<2x8x8xf32>
    %130 = vector.shape_cast %92 : vector<2x8xf32> to vector<2x8x1xf32>
    %131 = vector.shape_cast %89 : vector<2x8xf32> to vector<2x1x8xf32>
    %132 = vector.broadcast %130 : vector<2x8x1xf32> to vector<2x8x8xf32>
    %133 = vector.broadcast %131 : vector<2x1x8xf32> to vector<2x8x8xf32>
    %134 = arith.mulf %132, %133 : vector<2x8x8xf32>
    %135 = arith.subf %129, %134 : vector<2x8x8xf32>
    %136 = vector.shape_cast %89 : vector<2x8xf32> to vector<2x8x1xf32>
    %137 = vector.shape_cast %89 : vector<2x8xf32> to vector<2x1x8xf32>
    %138 = vector.broadcast %136 : vector<2x8x1xf32> to vector<2x8x8xf32>
    %139 = vector.broadcast %137 : vector<2x1x8xf32> to vector<2x8x8xf32>
    %140 = arith.mulf %138, %139 : vector<2x8x8xf32>
    %141 = vector.shape_cast %92 : vector<2x8xf32> to vector<2x8x1xf32>
    %142 = vector.shape_cast %92 : vector<2x8xf32> to vector<2x1x8xf32>
    %143 = vector.broadcast %141 : vector<2x8x1xf32> to vector<2x8x8xf32>
    %144 = vector.broadcast %142 : vector<2x1x8xf32> to vector<2x8x8xf32>
    %145 = arith.mulf %143, %144 : vector<2x8x8xf32>
    %146 = arith.addf %140, %145 : vector<2x8x8xf32>
    %147 = vector.shape_cast %135 : vector<2x8x8xf32> to vector<2x1x8x8xf32>
    %148 = vector.broadcast %147 : vector<2x1x8x8xf32> to vector<2x3x8x8xf32>
    %149 = arith.mulf %6, %148 : vector<2x3x8x8xf32>
    %150 = vector.shape_cast %146 : vector<2x8x8xf32> to vector<2x1x8x8xf32>
    %151 = vector.broadcast %150 : vector<2x1x8x8xf32> to vector<2x3x8x8xf32>
    %152 = arith.mulf %7, %151 : vector<2x3x8x8xf32>
    %153 = arith.addf %149, %152 : vector<2x3x8x8xf32>
    %cst_52 = arith.constant dense<0.000000e+00> : vector<2x3x8xf32>
    %154 = vector.multi_reduction <add>, %153, %cst_52 [3] : vector<2x3x8x8xf32> to vector<2x3x8xf32>
    %cst_53 = arith.constant 2.000000e+00 : f32
    %155 = vector.broadcast %cst_53 : f32 to vector<2x3x8xf32>
    %156 = arith.mulf %155, %154 : vector<2x3x8xf32>
    %157 = vector.shape_cast %120 : vector<2x3xf32> to vector<2x3x1xf32>
    %158 = vector.broadcast %157 : vector<2x3x1xf32> to vector<2x3x8xf32>
    %159 = arith.mulf %158, %156 : vector<2x3x8xf32>
    %cst_54 = arith.constant dense<0.000000e+00> : vector<2x8xf32>
    %160 = vector.multi_reduction <add>, %159, %cst_54 [1] : vector<2x3x8xf32> to vector<2x8xf32>
    %161 = vector.extract_strided_slice %120 {offsets = [0, 2], sizes = [2, 1], strides = [1, 1]} : vector<2x3xf32> to vector<2x1xf32>
    %162 = vector.broadcast %161 : vector<2x1xf32> to vector<2x8xf32>
    %163 = arith.mulf %162, %160 : vector<2x8xf32>
    %164 = arith.subf %86, %163 : vector<2x8xf32>
    %c2_i32 = arith.constant 2 : i32
    %165 = math.cos %164 : vector<2x8xf32>
    %cst_55 = arith.constant 1.000000e+00 : f32
    %166 = vector.broadcast %cst_55 : f32 to vector<2x8xf32>
    %167 = arith.mulf %166, %165 : vector<2x8xf32>
    %c2 = arith.constant 2 : index
    %c0_56 = arith.constant 0 : index
    %c0_57 = arith.constant 0 : index
    %168 = vector.load %arg9[%c2, %c0_56, %c0_57] : memref<3x2x8xf32, #tpu.memory_space<vmem>>, vector<1x2x8xf32>
    %169 = vector.shape_cast %168 : vector<1x2x8xf32> to vector<2x8xf32>
    %170 = vector.shape_cast %167 : vector<2x8xf32> to vector<1x2x8xf32>
    tpu.vector_store %arg9[%c2, %c0_56, %c0_57], %170 {strides = array<i32>} : memref<3x2x8xf32, #tpu.memory_space<vmem>>, vector<1x2x8xf32>,
    %171 = math.sin %164 : vector<2x8xf32>
    %cst_58 = arith.constant 1.000000e+00 : f32
    %172 = vector.broadcast %cst_58 : f32 to vector<2x8xf32>
    %173 = arith.mulf %172, %171 : vector<2x8xf32>
    %c2_59 = arith.constant 2 : index
    %c0_60 = arith.constant 0 : index
    %c0_61 = arith.constant 0 : index
    %174 = vector.load %arg10[%c2_59, %c0_60, %c0_61] : memref<3x2x8xf32, #tpu.memory_space<vmem>>, vector<1x2x8xf32>
    %175 = vector.shape_cast %174 : vector<1x2x8xf32> to vector<2x8xf32>
    %176 = vector.shape_cast %173 : vector<2x8xf32> to vector<1x2x8xf32>
    tpu.vector_store %arg10[%c2_59, %c0_60, %c0_61], %176 {strides = array<i32>} : memref<3x2x8xf32, #tpu.memory_space<vmem>>, vector<1x2x8xf32>,
    return
  }
  func.func @transform_0(%arg0: i32) -> (i32, i32) {
    %c0_i32 = arith.constant 0 : i32
    %c0_i32_0 = arith.constant 0 : i32
    return %arg0, %c0_i32 : i32, i32
  }
  func.func @transform_1(%arg0: i32) -> (i32, i32, i32, i32) {
    %c0_i32 = arith.constant 0 : i32
    %c0_i32_0 = arith.constant 0 : i32
    %c0_i32_1 = arith.constant 0 : i32
    %c0_i32_2 = arith.constant 0 : i32
    return %arg0, %c0_i32, %c0_i32_0, %c0_i32_1 : i32, i32, i32, i32
  }
  func.func @transform_2(%arg0: i32) -> (i32, i32, i32, i32) {
    %c0_i32 = arith.constant 0 : i32
    %c0_i32_0 = arith.constant 0 : i32
    %c0_i32_1 = arith.constant 0 : i32
    %c0_i32_2 = arith.constant 0 : i32
    return %arg0, %c0_i32, %c0_i32_0, %c0_i32_1 : i32, i32, i32, i32
  }
  func.func @transform_3(%arg0: i32) -> (i32, i32, i32) {
    %c0_i32 = arith.constant 0 : i32
    %c0_i32_0 = arith.constant 0 : i32
    %c0_i32_1 = arith.constant 0 : i32
    return %arg0, %c0_i32, %c0_i32_0 : i32, i32, i32
  }
  func.func @transform_4(%arg0: i32) -> (i32, i32) {
    %c0_i32 = arith.constant 0 : i32
    %c0_i32_0 = arith.constant 0 : i32
    %c0_i32_1 = arith.constant 0 : i32
    return %c0_i32, %c0_i32_0 : i32, i32
  }
  func.func @transform_5(%arg0: i32) -> (i32, i32) {
    %c0_i32 = arith.constant 0 : i32
    %c0_i32_0 = arith.constant 0 : i32
    %c0_i32_1 = arith.constant 0 : i32
    return %c0_i32, %c0_i32_0 : i32, i32
  }
  func.func @transform_6(%arg0: i32) -> (i32, i32) {
    %c0_i32 = arith.constant 0 : i32
    %c0_i32_0 = arith.constant 0 : i32
    %c0_i32_1 = arith.constant 0 : i32
    return %c0_i32, %c0_i32_0 : i32, i32
  }
  func.func @transform_7(%arg0: i32) -> (i32, i32) {
    %c0_i32 = arith.constant 0 : i32
    %c0_i32_0 = arith.constant 0 : i32
    %c0_i32_1 = arith.constant 0 : i32
    return %c0_i32, %c0_i32_0 : i32, i32
  }
  func.func @transform_8(%arg0: i32) -> (i32, i32, i32) {
    %c0_i32 = arith.constant 0 : i32
    %c0_i32_0 = arith.constant 0 : i32
    %c0_i32_1 = arith.constant 0 : i32
    return %c0_i32, %arg0, %c0_i32_0 : i32, i32, i32
  }
  func.func @transform_9(%arg0: i32) -> (i32, i32, i32) {
    %c0_i32 = arith.constant 0 : i32
    %c0_i32_0 = arith.constant 0 : i32
    %c0_i32_1 = arith.constant 0 : i32
    return %c0_i32, %arg0, %c0_i32_0 : i32, i32, i32
  }
  func.func @transform_10(%arg0: i32) -> (i32, i32, i32) {
    %c0_i32 = arith.constant 0 : i32
    %c0_i32_0 = arith.constant 0 : i32
    %c0_i32_1 = arith.constant 0 : i32
    return %c0_i32, %arg0, %c0_i32_0 : i32, i32, i32
  }
}

</mosaic_0001>

<bundles_post_ra>
// kernel: tpu_custom_call.1
= control target key start
LH: loop header
LB: loop body
LE: loop exit
PB: predicated region body
PF: predicated region fallthrough
CT: control target
= control target key end

     0   :  { %s2262_s0 = inlined_call_operand.hbm [shape: f32[2,8], index: 0, kind: input, shape index: {}]   ;;  %s2263_s1 = inlined_call_operand.hbm [shape: f32[2,3,8,8], index: 1, kind: input, shape index: {}]   ;;  %s2264_s2 = inlined_call_operand.hbm [shape: f32[2,3,8,8], index: 2, kind: input, shape index: {}]   ;;  %s2265_s3 = inlined_call_operand.vmem [shape: f32[2,3,16], index: 3, kind: input, shape index: {}]   ;;  %s2266_s4 = inlined_call_operand.vmem [shape: f32[8,16], index: 4, kind: input, shape index: {}]   ;;  %s2267_s5 = inlined_call_operand.vmem [shape: f32[8,16], index: 5, kind: input, shape index: {}]   ;;  %s2268_s6 = inlined_call_operand.vmem [shape: f32[1,16], index: 6, kind: input, shape index: {}]   ;;  %s2269_s7 = inlined_call_operand.<no memory space> [shape: f32[1,1], index: 7, kind: input, shape index: {}]   ;;  %s2270_s8 = inlined_call_operand.hbm [shape: f32[3,2,8], index: 8, kind: output, shape index: {0}]   ;;  %s2271_s9 = inlined_call_operand.hbm [shape: f32[3,2,8], index: 9, kind: output, shape index: {1}]   ;;  %s2272_s10 = inlined_call_operand.hbm [shape: f32[2,2,3], index: 10, kind: output, shape index: {2}]  }
   0x1   :  { %v16_v0 = vstv %s2269_s7 }
   0x2   :  { %17 = vst [vmem:[#allocation2] sm:$0x1] %v16_v0 }
   0x3   :  { %18 = vsyncpa [#allocation4], 0 }
   0x4   :  { %19 = vsyncpa [#allocation7], 0 }
   0x5   :  { %20 = vsyncpa [#allocation5], 0  ;;  %s37_s17 = sshll.u32 %s2263_s1, 4  ;;  %s38_s17 = int_to_ptr.hbm [resolvable:$true] %s37_s17 }
   0x6   :  { %21 = vsyncpa [#allocation11], 0  ;;  %s1817_s18 = smov [#allocation6]   ;;  %s27_s22 = sshll.u32 %s2262_s0, 4  ;;  %s28_s22 = int_to_ptr.hbm [resolvable:$true] %s27_s22 }
   0x7   :  { %s39_s19 = sshll.u32 %s1817_s18, 4  ;;  %s1818_s23 = smov 128   ;;  %s40_s19 = int_to_ptr.vmem [resolvable:$true] %s39_s19 }
   0x8   :  { %s1819_s24 = smov 8   ;;  %s1820_s7 = smov [#allocation3]  }
   0x9   :  { %45 = dma.hbm_to_vmem [thread:$0]  %s38_s17, 768, %s40_s19, [#allocation7], %s1818_s23, %s1818_s23, %s1819_s24  }
   0xa   :  { %s29_s25 = sshll.u32 %s1820_s7, 4  ;;  %s50_s28 = sshll.u32 %s2264_s2, 4  ;;  %s30_s25 = int_to_ptr.vmem [resolvable:$true] %s29_s25  ;;  %s51_s28 = int_to_ptr.hbm [resolvable:$true] %s50_s28 }
   0xb   :  { %32 = dma.hbm_to_vmem [thread:$0]  %s28_s22, 32, %s30_s25, [#allocation4]  }
   0xc   :  { %s1821_s1 = smov [#allocation8]  }
   0xd   :  { %s52_s29 = sshll.u32 %s1821_s1, 4  ;;  %s53_s29 = int_to_ptr.vmem [resolvable:$true] %s52_s29 }
   0xe   :  { %58 = dma.hbm_to_vmem [thread:$0]  %s51_s28, 768, %s53_s29, [#allocation7], %s1818_s23, %s1818_s23, %s1819_s24  }
   0xf   :  { %1809 = dma.done.wait [#allocation4], 32  }
  0x10   :  { %1810 = vsyncadd [#allocation4], 4294967264 }
  0x11   :  { %1811 = dma.done.wait [#allocation7], 1536  }
  0x12   :  { %1812 = vsyncadd [#allocation7], 4294965760  ;;  %v82_v1 = vld [vmem:[%s2267_s5] sm:$0xff]  ;;  %v1822_v15 = vmov 683565275   ;;  %s1567_s18 = sshll.u32 %s2271_s9, 4  ;;  %s1568_s18 = int_to_ptr.hbm [resolvable:$true] %s1567_s18 }
  0x13   :  { %v81_v2 = vld [vmem:[%s2266_s4] sm:$0xff]  ;;  %431 = vmatpush.msra.mxu0 %v82_v1  ;;  %1006 = vmatpush.msra.mxu2 %v82_v1  ;;  %v1823_v17 = vmov 2475754826   ;;  %v1824_v19 = vmov 2131351028   ;;  %s1830_s19 = smov [#allocation9]  }
  0x14   :  { %v1907_v3 = vld [vmem:[#allocation3] sm:$0x3]  ;;  %454 = vmatpush.msra.mxu1 %v81_v2  ;;  %1029 = vmatpush.msra.mxu3 %v81_v2  ;;  %v1825_v21 = vmov 2102212464   ;;  %v1826_v23 = vmov 920167782  }
  0x15   :  { %v103_v4 = vand.u32 2139095040, %v1907_v3  ;;  %v100_v6 = vand.u32 2147483647, %v1907_v3  ;;  %v1827_v29 = vmov 1326507024   ;;  %vm102_vm12 = vcmp.lt.s32.totalorder %v1907_v3, 0 }
  0x16   :  { %s2248_s20 = sshll.u32 %s1830_s19, 4  ;;  %s1554_s23 = sshll.u32 %s2270_s8, 4  ;;  %s1553_s20 = int_to_ptr.vmem [resolvable:$true] %s2248_s20  ;;  %s1555_s23 = int_to_ptr.hbm [resolvable:$true] %s1554_s23 }
  0x17   :  { %v104_v5 = vshrl.u32 %v103_v4, 23  ;;  %v107_v9 = vand.u32 8388607, %v100_v6  ;;  %v1828_v4 = vmov 0   ;;  %vm101_vm13 = vcmp.le.f32.partialorder %v100_v6, 0.7853982 }
  0x18   :  { %s1831_s9 = smov [#allocation12]   ;;  %s1580_s26 = sshll.u32 %s2272_s10, 4  ;;  %s1581_s26 = int_to_ptr.hbm [resolvable:$true] %s1580_s26 }
  0x19   :  { %v1603_v7 = vadd.s32 4294967169, %v104_v5  ;;  %v108_v12 = vor.u32 8388608, %v107_v9  ;;  %s1578_s24 = sshll.u32 %s1831_s9, 4  ;;  %s1832_s8 = smov 32   ;;  %s1579_s24 = int_to_ptr.vmem [resolvable:$true] %s1578_s24 }
  0x1a   :  { %s1833_s27 = smov 2  }
  0x1b   :  { %v110_v8 = vadd.s32 1, %v1603_v7  ;;  %v1926_v31 = vshll.u32 %v108_v12, 8 }
  0x1d   :  { %vm111_vm0 = vcmp.gt.s32.totalorder %v110_v8, 0  ;;  %v149_v43 = vand.u32 65535, %v1926_v31  ;;  %v150_v44 = vshrl.u32 %v1926_v31, 16 }
  0x1e   :  { %v112_v10 = vsel %vm111_vm0, %v110_v8, 0 }
  0x1f   :  { %v114_v11 = vand.u32 31, %v112_v10  ;;  %v1913_v13 = vshrl.u32 %v112_v10, 5 }
  0x21   :  { %v115_v14 = vsub.s32 32, %v114_v11  ;;  %v117_v16 = vshll.u32 %v1822_v15, %v114_v11  ;;  %v120_v18 = vshll.u32 %v1823_v17, %v114_v11  ;;  %v123_v20 = vshll.u32 %v1824_v19, %v114_v11 }
  0x22   :  { %v126_v22 = vshll.u32 %v1825_v21, %v114_v11  ;;  %v129_v24 = vshll.u32 %v1826_v23, %v114_v11  ;;  %vm132_vm1 = vcmp.lt.s32.totalorder %v1913_v13, 1  ;;  %vm135_vm2 = vcmp.lt.s32.totalorder %v1913_v13, 4 }
  0x23   :  { %v118_v25 = vshrl.u32 %v1823_v17, %v115_v14  ;;  %v121_v26 = vshrl.u32 %v1824_v19, %v115_v14  ;;  %v124_v27 = vshrl.u32 %v1825_v21, %v115_v14  ;;  %v127_v28 = vshrl.u32 %v1826_v23, %v115_v14 }
  0x24   :  { %v130_v30 = vshrl.u32 %v1827_v29, %v115_v14  ;;  %vm134_vm3 = vcmp.lt.s32.totalorder %v1913_v13, 3  ;;  %vm133_vm4 = vcmp.lt.s32.totalorder %v1913_v13, 2  ;;  %v116_v51 = vshrl.u32 %v1822_v15, %v115_v14 }
  0x25   :  { %v119_v32 = vor.u32 %v118_v25, %v117_v16  ;;  %v122_v33 = vor.u32 %v121_v26, %v120_v18  ;;  %v125_v34 = vor.u32 %v124_v27, %v123_v20  ;;  %v128_v35 = vor.u32 %v127_v28, %v126_v22 }
  0x26   :  { %v131_v36 = vor.u32 %v130_v30, %v129_v24 }
  0x27   :  { %v140_v37 = vsel %vm132_vm1, %v119_v32, %v122_v33  ;;  %v144_v38 = vsel %vm132_vm1, %v122_v33, %v125_v34  ;;  %v141_v39 = vsel %vm135_vm2, %v128_v35, 920167782  ;;  %v136_v0 = vsel %vm132_vm1, %v116_v51, %v119_v32 }
  0x28   :  { %v145_v40 = vsel %vm135_vm2, %v131_v36, 1326507024  ;;  %v142_v41 = vsel %vm134_vm3, %v125_v34, %v141_v39  ;;  %v137_v2 = vsel %vm135_vm2, %v125_v34, 2102212464 }
  0x29   :  { %v146_v42 = vsel %vm134_vm3, %v128_v35, %v145_v40  ;;  %v143_v45 = vsel %vm133_vm4, %v140_v37, %v142_v41  ;;  %v138_v16 = vsel %vm134_vm3, %v122_v33, %v137_v2 }
  0x2a   :  { %v147_v46 = vsel %vm133_vm4, %v144_v38, %v146_v42  ;;  %v173_v49 = vand.u32 65535, %v143_v45  ;;  %v174_v50 = vshrl.u32 %v143_v45, 16  ;;  %v139_v28 = vsel %vm133_vm4, %v136_v0, %v138_v16 }
  0x2b   :  { %v151_v47 = vand.u32 65535, %v147_v46  ;;  %v152_v48 = vshrl.u32 %v147_v46, 16  ;;  %v193_v35 = vmul.u32 %v1926_v31, %v139_v28  ;;  %vm243_vm4 = vweird.f32 %v1907_v3 }
  0x2c   :  { %v175_v55 = vmul.u32 %v173_v49, %v149_v43  ;;  %v176_v56 = vmul.u32 %v174_v50, %v149_v43  ;;  %v177_v57 = vmul.u32 %v173_v49, %v150_v44  ;;  %v178_v61 = vmul.u32 %v174_v50, %v150_v44 }
  0x2d   :  { %v153_v52 = vmul.u32 %v151_v47, %v149_v43  ;;  %v154_v53 = vmul.u32 %v152_v48, %v149_v43  ;;  %v155_v54 = vmul.u32 %v151_v47, %v150_v44  ;;  %v156_v58 = vmul.u32 %v152_v48, %v150_v44 }
  0x2e   :  { %v179_v62 = vshll.u32 %v176_v56, 16  ;;  %v181_v63 = vshll.u32 %v177_v57, 16  ;;  %v180_v12 = vshrl.u32 %v176_v56, 16  ;;  %v182_v24 = vshrl.u32 %v177_v57, 16 }
  0x2f   :  { %v157_v59 = vshll.u32 %v154_v53, 16  ;;  %v159_v60 = vshll.u32 %v155_v54, 16  ;;  %v158_v8 = vshrl.u32 %v154_v53, 16  ;;  %v160_v18 = vshrl.u32 %v155_v54, 16 }
  0x30   :  { %vm183_vm6 = vc.u32 %v175_v55, %v179_v62  ;;  %v185_v7 = vadd.s32 %v179_v62, %v175_v55  ;;  %v529_v55 = vlaneseq }
  0x31   :  { %vm161_vm5 = vc.u32 %v153_v52, %v157_v59  ;;  %v163_v1 = vadd.s32 %v157_v59, %v153_v52  ;;  %v184_v10 = vsel %vm183_vm6, 1, %v1828_v4  ;;  %vm409_vm6 = vcmask 58368  }
  0x32   :  { %v162_v5 = vsel %vm161_vm5, 1, %v1828_v4  ;;  %v186_v14 = vadd.s32 %v184_v10, %v178_v61  ;;  %vm187_vm8 = vc.u32 %v185_v7, %v181_v63  ;;  %v189_v27 = vadd.s32 %v185_v7, %v181_v63 }
  0x33   :  { %v164_v9 = vadd.s32 %v162_v5, %v156_v58  ;;  %vm165_vm7 = vc.u32 %v163_v1, %v159_v60  ;;  %v188_v22 = vsel %vm187_vm8, 1, %v1828_v4  ;;  %v1964_v57 = vshrl.u32 %v529_v55, 7 }
  0x34   :  { %v166_v11 = vsel %vm165_vm7, 1, %v1828_v4  ;;  %v190_v25 = vadd.s32 %v188_v22, %v186_v14  ;;  %vm412_vm5 = vcmask 64512   ;;  %vm474_vm7 = vcmask 124928  }
  0x35   :  { %v168_v20 = vadd.s32 %v166_v11, %v164_v9  ;;  %1643 = vset.pattern.permute.xlu1 %v1964_v57  ;;  %1642 = vset.pattern.permute.xlu0 %v1964_v57 }
  0x36   :  { %v191_v30 = vadd.s32 %v190_v25, %v180_v12  ;;  %1645 = vset.pattern.permute.xlu2 %v1964_v57 }
  0x37   :  { %v169_v26 = vadd.s32 %v168_v20, %v158_v8 }
  0x38   :  { %v192_v34 = vadd.s32 %v191_v30, %v182_v24 }
  0x39   :  { %v170_v32 = vadd.s32 %v169_v26, %v160_v18 }
  0x3a   :  { %v196_v36 = vadd.s32 1, %v192_v34 }
  0x3b   :  { %vm195_vm9 = vc.u32 %v170_v32, %v189_v27  ;;  %v194_v13 = vadd.s32 %v189_v27, %v170_v32 }
  0x3c   :  { %v197_v37 = vsel %vm195_vm9, %v196_v36, %v192_v34 }
  0x3d   :  { %v198_v33 = vadd.s32 %v197_v37, %v193_v35 }
  0x3f   :  { %v199_v38 = vadd.s32 536870912, %v198_v33 }
  0x41   :  { %v200_v39 = vshrl.u32 %v199_v38, 30 }
  0x43   :  { %v201_v40 = vshll.u32 %v200_v39, 30  ;;  %v224_v59 = vsub.s32 4, %v200_v39 }
  0x45   :  { %v202_v41 = vsub.s32 %v198_v33, %v201_v40  ;;  %v225_v62 = vsel %vm102_vm12, %v224_v59, %v200_v39 }
  0x46   :  { %v227_v1 = vsel %vm101_vm13, 0, %v225_v62 }
  0x47   :  { %vm203_vm10 = vcmp.lt.s32.totalorder %v202_v41, 0  ;;  %v204_v42 = vsub.s32 0, %v202_v41  ;;  %v398_v9 = vadd.s32 3, %v227_v1  ;;  %v244_v18 = vand.u32 3, %v227_v1 }
  0x49   :  { %v205_v43 = vsel %vm203_vm10, %v204_v42, %v202_v41  ;;  %v399_v16 = vand.u32 3, %v398_v9  ;;  %vm249_vm15 = vcmp.eq.s32.totalorder %v244_v18, 2  ;;  %vm246_vm2 = vcmp.eq.s32.totalorder %v244_v18, 0  ;;  %v1647_v42 = vld [vmem:[#allocation2] ss:$0 sm:$0xff]  ;;  %v1989_v9 = vld [vmem:[#allocation8 + $0x20] sm:$0xff] }
  0x4a   :  { %v206_v44 = vclz %v205_v43  ;;  %vm245_vm3 = vcmp.lt.s32.totalorder %v244_v18, 2  ;;  %v1999_v18 = vld [vmem:[%s2265_s3 + $0x4] sm:$0x7]  ;;  %vm533_vm10 = vcmask 1041409  }
  0x4b   :  { %vm404_vm14 = vcmp.eq.s32.totalorder %v399_v16, 2  ;;  %vm400_vm0 = vcmp.lt.s32.totalorder %v399_v16, 2  ;;  %vm401_vm1 = vcmp.eq.s32.totalorder %v399_v16, 0 }
  0x4c   :  { %v1604_v45 = vadd.s32 4294967294, %v206_v44 }
  0x4e   :  { %vm1605_vm11 = vcmp.lt.s32.totalorder %v1604_v45, 0 }
  0x4f   :  { %v209_v46 = vsel %vm1605_vm11, 0, %v1604_v45 }
  0x50   :  { %v210_v47 = vsub.s32 32, %v209_v46  ;;  %v211_v48 = vshll.u32 %v202_v41, %v209_v46  ;;  %v214_v49 = vsub.s32 4294967266, %v209_v46 }
  0x52   :  { %v212_v31 = vshrl.u32 %v194_v13, %v210_v47  ;;  %v215_v50 = vadd.s32 127, %v214_v49 }
  0x54   :  { %v213_v51 = vor.u32 %v212_v31, %v211_v48  ;;  %v216_v52 = vshll.u32 %v215_v50, 23  ;;  %v1980_v31 = vld [vmem:[#allocation6] sm:$0xff]  ;;  %v1982_v50 = vld [vmem:[#allocation8] sm:$0xff] }
  0x56   :  { %v217_v53 = vor.u32 4788187, %v216_v52  ;;  %v220_v54 = vcvt.s32.f32 %v213_v51 }
  0x58   :  { %v218_v56 = vand.u32 2147483647, %v217_v53 }
  0x5a   :  { %v221_v58 = vmul.f32 %v220_v54, %v218_v56 }
  0x5c   :  { %v222_v60 = vxor.u32 2147483648, %v221_v58 }
  0x5e   :  { %v223_v61 = vsel %vm102_vm12, %v222_v60, %v221_v58  ;;  %vm643_vm12 = vcmask 1042434  }
  0x5f   :  { %v226_v63 = vsel %vm101_vm13, %v1907_v3, %v223_v61 }
  0x60   :  { %v228_v0 = vmul.f32 %v226_v63, %v226_v63 }
  0x62   :  { %v229_v2 = vmul.f32 -0.001358992, %v228_v0  ;;  %v236_v5 = vmul.f32 -0.00019511016, %v228_v0 }
  0x64   :  { %v230_v7 = vadd.f32 0.041655596, %v229_v2  ;;  %v237_v8 = vadd.f32 0.008332121, %v236_v5 }
  0x66   :  { %v231_v10 = vmul.f32 %v230_v7, %v228_v0  ;;  %v238_v11 = vmul.f32 %v237_v8, %v228_v0  ;;  %v1987_v8 = vld [vmem:[#allocation6 + $0x20] sm:$0xff] }
  0x68   :  { %v232_v12 = vadd.f32 -0.4999988, %v231_v10  ;;  %v239_v14 = vadd.f32 -0.16666654, %v238_v11  ;;  %v1994_v10 = vld [vmem:[%s2265_s3] sm:$0x7] }
  0x69   :  { %s1829_s3 = smov [#allocation10]  }
  0x6a   :  { %v233_v20 = vmul.f32 %v232_v12, %v228_v0  ;;  %v240_v6 = vmul.f32 %v239_v14, %v228_v0 }
  0x6c   :  { %v234_v22 = vadd.f32 1.0, %v233_v20  ;;  %v241_v24 = vadd.f32 1.0, %v240_v6 }
  0x6e   :  { %v242_v25 = vmul.f32 %v241_v24, %v226_v63  ;;  %v250_v26 = vxor.u32 2147483648, %v234_v22 }
  0x70   :  { %v247_v27 = vxor.u32 2147483648, %v242_v25  ;;  %v406_v28 = vsel %vm404_vm14, %v250_v26, %v242_v25  ;;  %v251_v30 = vsel %vm249_vm15, %v250_v26, %v242_v25  ;;  %v2007_v25 = vld [vmem:[%s2268_s6] ss:$0 sm:$0xff]  ;;  %vm651_vm15 = vcmask 59392   ;;  %s2243_s6 = sshll.u32 %s1829_s3, 4  ;;  %s1566_s6 = int_to_ptr.vmem [resolvable:$true] %s2243_s6 }
  0x72   :  { %v403_v32 = vsel %vm401_vm1, %v234_v22, %v247_v27  ;;  %v248_v34 = vsel %vm246_vm2, %v234_v22, %v247_v27 }
  0x73   :  { %v407_v35 = vsel %vm400_vm0, %v403_v32, %v406_v28  ;;  %v252_v36 = vsel %vm245_vm3, %v248_v34, %v251_v30  ;;  %vm536_vm3 = vcmask 17408  }
  0x74   :  { %v408_v37 = vsel %vm243_vm4, nan, %v407_v35  ;;  %v253_v33 = vsel %vm243_vm4, nan, %v252_v36  ;;  %v2013_v36 = vld [vmem:[#allocation6 + $0x8] sm:$0xff] }
  0x75   :  { %411 = vst.msk [vmem:[#allocation10] sm:$0x3] %vm409_vm6, %v408_v37  ;;  %1609 = vmatmul.msk.f32.vlgmr.msra.gmra.mxu0 %vm412_vm5, %v408_v37  ;;  %1610 = vmatmul.msk.f32.vlgmr.msra.gmra.mxu1 %vm412_vm5, %v253_v33  ;;  %v553_v38 = vperm.slane %v408_v37, 0  ;;  %v538_v39 = vperm.slane %v253_v33, 0  ;;  %v566_v40 = vperm.slane %v408_v37, 1  ;;  %v545_v41 = vperm.slane %v253_v33, 1 }
  0x76   :  { %410 = vst.msk [vmem:[#allocation9] sm:$0x3] %vm409_vm6, %v253_v33  ;;  %v552_v45 = vrot.slane %v408_v37, 1  ;;  %v573_v13 = vrot.slane %v253_v33, 1  ;;  %v2015_v37 = vld [vmem:[#allocation8 + $0x8] sm:$0xff] }
  0x77   :  { %564 = vperm.xlu1 %1643, %v553_v38   ;;  %543 = vperm.xlu0 %1642, %v538_v39  }
  0x78   :  { %v554_v53 = vperm.slane %v552_v45, 0  ;;  %v575_v54 = vperm.slane %v573_v13, 0 }
  0x7f   :  { %571 = vperm.xlu1 %1643, %v566_v40   ;;  %550 = vperm.xlu0 %1642, %v545_v41  }
  0x87   :  { %1644 = vset.pattern.permute.xlu0 %v1828_v4 }
  0x88   :  { %484 = vperm.xlu0 %1644, %v1647_v42   ;;  %v2021_v42 = vld [vmem:[#allocation6 + $0x18] sm:$0xff] }
  0x90   :  { %1646 = vset.pattern.permute.xlu0 %v1964_v57 }
  0xe9   :  { %v565_v43 = vpop.permute.xlu1 %564  ;;  %v544_v44 = vpop.permute.xlu0 %543 }
  0xea   :  { %v578_v46 = vmul.f32 %v565_v43, %v538_v39  ;;  %v584_v47 = vmul.f32 %v565_v43, %v553_v38  ;;  %v557_v48 = vmul.f32 %v553_v38, %v544_v44  ;;  %v582_v49 = vmul.f32 %v544_v44, %v538_v39  ;;  %v2023_v43 = vld [vmem:[#allocation8 + $0x18] sm:$0xff] }
  0xec   :  { %v580_v51 = vsub.f32 %v557_v48, %v578_v46  ;;  %v586_v52 = vadd.f32 %v584_v47, %v582_v49  ;;  %v2028_v47 = vld [vmem:[#allocation6 + $0x10] sm:$0xff]  ;;  %v2030_v48 = vld [vmem:[#allocation8 + $0x10] sm:$0xff] }
  0xee   :  { %v588_v56 = vmul.f32 %v580_v51, %v1980_v31  ;;  %v594_v57 = vmul.f32 %v586_v52, %v1982_v50  ;;  %v589_v38 = vmul.f32 %v580_v51, %v2013_v36  ;;  %v595_v39 = vmul.f32 %v586_v52, %v2015_v37 }
  0xf0   :  { %v600_v58 = vadd.f32 %v594_v57, %v588_v56  ;;  %v601_v41 = vadd.f32 %v595_v39, %v589_v38  ;;  %v2035_v57 = vld [vmem:[#allocation6 + $0x28] sm:$0xff] }
  0xf1   :  { %v572_v59 = vpop.permute.xlu1 %571  ;;  %v551_v60 = vpop.permute.xlu0 %550 }
  0xf2   :  { %v433_v61 = vpop.f32.mrf.mxu0  ;;  %v456_v62 = vpop.f32.mrf.mxu1  ;;  %v579_v63 = vmul.f32 %v575_v54, %v572_v59  ;;  %v585_v0 = vmul.f32 %v572_v59, %v554_v53  ;;  %v558_v1 = vmul.f32 %v554_v53, %v551_v60  ;;  %v583_v2 = vmul.f32 %v575_v54, %v551_v60 }
  0xf3   :  { %v457_v5 = vadd.f32 %v456_v62, %v433_v61  ;;  %v606_v7 = vsel %vm412_vm5, %v600_v58, 0.0  ;;  %v609_v44 = vsel %vm412_vm5, %v601_v41, 0.0  ;;  %v590_v53 = vmul.f32 %v580_v51, %v2028_v47  ;;  %v2037_v58 = vld [vmem:[#allocation8 + $0x28] sm:$0xff] }
  0xf4   :  { %v581_v11 = vsub.f32 %v558_v1, %v579_v63  ;;  %v587_v12 = vadd.f32 %v585_v0, %v583_v2  ;;  %607 = vadd.xlane.f32.xlu1 %v606_v7  ;;  %v596_v54 = vmul.f32 %v586_v52, %v2030_v48 }
  0xf5   :  { %v460_v14 = vrot.slane %v457_v5, 1  ;;  %v461_v16 = vperm.slane %v457_v5, 0 }
  0xf6   :  { %v592_v20 = vmul.f32 %v581_v11, %v1987_v8  ;;  %v598_v6 = vmul.f32 %v587_v12, %v1989_v9  ;;  %v591_v45 = vmul.f32 %v581_v11, %v2021_v42  ;;  %v597_v13 = vmul.f32 %v587_v12, %v2023_v43 }
  0xf7   :  { %v462_v22 = vperm.slane %v460_v14, 0  ;;  %v465_v24 = vadd.f32 %v461_v16, %v1994_v10  ;;  %v602_v56 = vadd.f32 %v596_v54, %v590_v53  ;;  %v593_v60 = vmul.f32 %v581_v11, %v2035_v57 }
  0xf8   :  { %v604_v26 = vadd.f32 %v598_v6, %v592_v20  ;;  %v603_v46 = vadd.f32 %v597_v13, %v591_v45  ;;  %v599_v61 = vmul.f32 %v587_v12, %v2037_v58 }
  0xf9   :  { %v467_v27 = vmax.f32 %v465_v24, 0.0  ;;  %v466_v28 = vadd.f32 %v462_v22, %v1999_v18  ;;  %v612_v59 = vsel %vm412_vm5, %v602_v56, 0.0 }
  0xfa   :  { %v618_v30 = vsel %vm412_vm5, %v604_v26, 0.0  ;;  %v615_v49 = vsel %vm412_vm5, %v603_v46, 0.0  ;;  %v605_v62 = vadd.f32 %v599_v61, %v593_v60  ;;  %v2043_v51 = vpop.permute.xlu0 %484 }
  0xfb   :  { %v472_v32 = vmul.f32 %v2007_v25, %v467_v27  ;;  %619 = vadd.xlane.f32.xlu0 %v618_v30  ;;  %v468_v35 = vmax.f32 %v466_v28, 0.0 }
  0xfc   :  { %v621_v63 = vsel %vm412_vm5, %v605_v62, 0.0 }
  0xfd   :  { %v475_v34 = vsel %vm474_vm7, %v472_v32, 0.0  ;;  %v473_v33 = vmul.f32 %v2007_v25, %v468_v35 }
  0xfe   :  { %476 = vadd.xlane.f32.xlu2 %v475_v34  ;;  %v2048_v34 = vand.u32 127, %v529_v55 }
  0xff   :  { %v478_v40 = vsel %vm474_vm7, %v473_v33, 0.0 }
 0x106   :  { %479 = vadd.xlane.f32.xlu2 %v478_v40 }
 0x10e   :  { %610 = vadd.xlane.f32.xlu2 %v609_v44 }
 0x116   :  { %616 = vadd.xlane.f32.xlu2 %v615_v49 }
 0x11e   :  { %613 = vadd.xlane.f32.xlu2 %v612_v59 }
 0x126   :  { %622 = vadd.xlane.f32.xlu2 %v621_v63 }
 0x167   :  { %v608_v30 = vpop.xlane.xlu1 %607 }
 0x168   :  { %v624_v35 = vmul.f32 2.0, %v608_v30 }
 0x16a   :  { %v636_v44 = vperm.slane %v624_v35, %v2048_v34 }
 0x16e   :  { %v620_v61 = vpop.xlane.xlu0 %619 }
 0x171   :  { %v477_v52 = vpop.xlane.xlu2 %476 }
 0x172   :  { %v487_v0 = vadd.f32 %v2043_v51, %v477_v52 }
 0x174   :  { %v489_v1 = vsub.f32 0.0, %v487_v0 }
 0x176   :  { %v491_v2 = vmul.f32 1.442695, %v489_v1 }
 0x178   :  { %1649 = vpow2.f32 %v491_v2 }
 0x179   :  { %v480_v5 = vpop.xlane.xlu2 %479 }
 0x17a   :  { %v488_v7 = vadd.f32 %v2043_v51, %v480_v5 }
 0x17c   :  { %v490_v14 = vsub.f32 0.0, %v488_v7  ;;  %v628_v7 = vmul.f32 2.0, %v620_v61 }
 0x17e   :  { %v1650_v11 = vpop.eup %1649  ;;  %v493_v16 = vmul.f32 1.442695, %v490_v14 }
 0x17f   :  { %v495_v12 = vadd.f32 1.0, %v1650_v11 }
 0x180   :  { %1651 = vpow2.f32 %v493_v16 }
 0x181   :  { %1653 = vrcp.f32 %v495_v12  ;;  %v611_v20 = vpop.xlane.xlu2 %610  ;;  %v508_v40 = vand.u32 2147483648, %v495_v12  ;;  %vm502_vm9 = vweird.f32 %v495_v12  ;;  %v506_v13 = vand.u32 2147483647, %v495_v12 }
 0x182   :  { %v625_v33 = vmul.f32 2.0, %v611_v20 }
 0x183   :  { %v509_v56 = vor.u32 1.1754944e-38, %v508_v40  ;;  %vm507_vm14 = vcmp.eq.f32.partialorder %v506_v13, 8.507059e+37 }
 0x184   :  { %v637_v45 = vperm.slane %v625_v33, %v2048_v34 }
 0x186   :  { %v1652_v6 = vpop.eup %1651  ;;  %v642_v52 = vsel %vm533_vm10, %v637_v45, %v636_v44 }
 0x187   :  { %v1654_v22 = vpop.eup %1653  ;;  %v496_v24 = vadd.f32 1.0, %v1652_v6 }
 0x188   :  { %v498_v26 = vmul.f32 %v1654_v22, %v495_v12  ;;  %vm503_vm8 = vweird.f32 %v1654_v22 }
 0x189   :  { %1655 = vrcp.f32 %v496_v24  ;;  %v617_v27 = vpop.xlane.xlu2 %616  ;;  %vm2052_vm11 = vmor %vm502_vm9, %vm503_vm8  ;;  %v523_v59 = vand.u32 2147483648, %v496_v24  ;;  %v521_v63 = vand.u32 2147483647, %v496_v24  ;;  %vm517_vm0 = vweird.f32 %v496_v24 }
 0x18a   :  { %v499_v28 = vsub.f32 1.0, %v498_v26  ;;  %v627_v0 = vmul.f32 2.0, %v617_v27 }
 0x18b   :  { %v524_v11 = vor.u32 1.1754944e-38, %v523_v59  ;;  %vm522_vm2 = vcmp.eq.f32.partialorder %v521_v63, 8.507059e+37 }
 0x18c   :  { %v500_v32 = vmul.f32 %v1654_v22, %v499_v28  ;;  %v639_v12 = vperm.slane %v627_v0, %v2048_v34 }
 0x18e   :  { %v501_v39 = vadd.f32 %v1654_v22, %v500_v32 }
 0x18f   :  { %v1656_v38 = vpop.eup %1655 }
 0x190   :  { %v513_v41 = vmul.f32 %v1656_v38, %v496_v24  ;;  %v505_v54 = vsel %vm2052_vm11, %v1654_v22, %v501_v39  ;;  %vm518_vm13 = vweird.f32 %v1656_v38  ;;  %v640_v24 = vperm.slane %v628_v7, %v2048_v34 }
 0x191   :  { %v614_v46 = vpop.xlane.xlu2 %613  ;;  %v510_v1 = vsel %vm507_vm14, %v509_v56, %v505_v54  ;;  %vm519_vm1 = vmor %vm517_vm0, %vm518_vm13 }
 0x192   :  { %v514_v49 = vsub.f32 1.0, %v513_v41  ;;  %v626_v55 = vmul.f32 2.0, %v614_v46  ;;  %v531_v26 = vperm.slane %v510_v1, %v2048_v34  ;;  %v666_v59 = vperm.slane %v510_v1, 2 }
 0x194   :  { %v515_v60 = vmul.f32 %v1656_v38, %v514_v49  ;;  %v638_v62 = vperm.slane %v626_v55, %v2048_v34 }
 0x196   :  { %v644_v2 = vsel %vm643_vm12, %v638_v62, %v642_v52  ;;  %v516_v5 = vadd.f32 %v1656_v38, %v515_v60 }
 0x197   :  { %v649_v14 = vmul.f32 %v644_v2, %v510_v1 }
 0x198   :  { %v520_v16 = vsel %vm519_vm1, %v1656_v38, %v516_v5  ;;  %v645_v38 = vsel %vm533_vm10, %v640_v24, %v639_v12 }
 0x199   :  { %v652_v20 = vsel %vm651_vm15, %v649_v14, 0.0  ;;  %v525_v6 = vsel %vm522_vm2, %v524_v11, %v520_v16  ;;  %v623_v22 = vpop.xlane.xlu2 %622 }
 0x19a   :  { %v653_v27 = vrot.slane %v652_v20, 4  ;;  %v532_v28 = vperm.slane %v525_v6, %v2048_v34  ;;  %v629_v30 = vmul.f32 2.0, %v623_v22  ;;  %v667_v60 = vperm.slane %v525_v6, 2 }
 0x19c   :  { %v654_v32 = vadd.f32 %v653_v27, %v652_v20  ;;  %v534_v35 = vsel %vm533_vm10, %v532_v28, %v531_v26  ;;  %v641_v33 = vperm.slane %v629_v30, %v2048_v34 }
 0x19d   :  { %537 = vst.msk [vmem:[#allocation12] sm:$0x3] %vm536_vm3, %v534_v35 }
 0x19e   :  { %v655_v39 = vrot.slane %v654_v32, 2  ;;  %v646_v40 = vsel %vm643_vm12, %v641_v33, %v645_v38 }
 0x19f   :  { %v650_v41 = vmul.f32 %v646_v40, %v525_v6 }
 0x1a0   :  { %v656_v45 = vadd.f32 %v655_v39, %v654_v32 }
 0x1a1   :  { %v659_v44 = vsel %vm651_vm15, %v650_v41, 0.0 }
 0x1a2   :  { %v660_v13 = vrot.slane %v659_v44, 4  ;;  %v657_v49 = vrot.slane %v656_v45, 1 }
 0x1a4   :  { %v661_v46 = vadd.f32 %v660_v13, %v659_v44  ;;  %v658_v54 = vadd.f32 %v657_v49, %v656_v45 }
 0x1a6   :  { %v662_v53 = vrot.slane %v661_v46, 2  ;;  %v668_v62 = vmul.f32 %v666_v59, %v658_v54 }
 0x1a8   :  { %v663_v55 = vadd.f32 %v662_v53, %v661_v46 }
 0x1aa   :  { %v664_v56 = vrot.slane %v663_v55, 1 }
 0x1ac   :  { %v665_v61 = vadd.f32 %v664_v56, %v663_v55 }
 0x1ae   :  { %v669_v63 = vmul.f32 %v667_v60, %v665_v61 }
 0x1b0   :  { %v672_v52 = vsel %vm533_vm10, %v669_v63, %v668_v62 }
 0x1b1   :  { %v2074_v0 = vsub.f32 %v1907_v3, %v672_v52 }
 0x1b3   :  { %v678_v2 = vand.u32 2139095040, %v2074_v0  ;;  %v675_v14 = vand.u32 2147483647, %v2074_v0 }
 0x1b5   :  { %v679_v5 = vshrl.u32 %v678_v2, 23  ;;  %v682_v1 = vand.u32 8388607, %v675_v14 }
 0x1b7   :  { %v1611_v7 = vadd.s32 4294967169, %v679_v5  ;;  %v683_v6 = vor.u32 8388608, %v682_v1 }
 0x1b9   :  { %v685_v11 = vadd.s32 1, %v1611_v7  ;;  %v2093_v13 = vshll.u32 %v683_v6, 8 }
 0x1bb   :  { %vm686_vm4 = vcmp.gt.s32.totalorder %v685_v11, 0  ;;  %v724_v61 = vand.u32 65535, %v2093_v13  ;;  %v725_v62 = vshrl.u32 %v2093_v13, 16 }
 0x1bc   :  { %v687_v16 = vsel %vm686_vm4, %v685_v11, 0 }
 0x1bd   :  { %v689_v12 = vand.u32 31, %v687_v16  ;;  %v2080_v22 = vshrl.u32 %v687_v16, 5 }
 0x1bf   :  { %v690_v20 = vsub.s32 32, %v689_v12  ;;  %v692_v3 = vshll.u32 %v1822_v15, %v689_v12  ;;  %v695_v26 = vshll.u32 %v1823_v17, %v689_v12  ;;  %v698_v30 = vshll.u32 %v1824_v19, %v689_v12 }
 0x1c0   :  { %v701_v32 = vshll.u32 %v1825_v21, %v689_v12  ;;  %v704_v33 = vshll.u32 %v1826_v23, %v689_v12  ;;  %vm707_vm8 = vcmp.lt.s32.totalorder %v2080_v22, 1  ;;  %vm710_vm9 = vcmp.lt.s32.totalorder %v2080_v22, 4 }
 0x1c1   :  { %v693_v27 = vshrl.u32 %v1823_v17, %v690_v20  ;;  %v696_v28 = vshrl.u32 %v1824_v19, %v690_v20  ;;  %v699_v24 = vshrl.u32 %v1825_v21, %v690_v20  ;;  %v702_v35 = vshrl.u32 %v1826_v23, %v690_v20 }
 0x1c2   :  { %v705_v38 = vshrl.u32 %v1827_v29, %v690_v20  ;;  %vm709_vm11 = vcmp.lt.s32.totalorder %v2080_v22, 3  ;;  %vm708_vm13 = vcmp.lt.s32.totalorder %v2080_v22, 2 }
 0x1c3   :  { %v694_v39 = vor.u32 %v693_v27, %v692_v3  ;;  %v697_v40 = vor.u32 %v696_v28, %v695_v26  ;;  %v700_v41 = vor.u32 %v699_v24, %v698_v30  ;;  %v703_v44 = vor.u32 %v702_v35, %v701_v32 }
 0x1c4   :  { %v706_v45 = vor.u32 %v705_v38, %v704_v33 }
 0x1c5   :  { %v715_v46 = vsel %vm707_vm8, %v694_v39, %v697_v40  ;;  %v719_v49 = vsel %vm707_vm8, %v697_v40, %v700_v41  ;;  %v716_v53 = vsel %vm710_vm9, %v703_v44, 920167782 }
 0x1c6   :  { %v720_v55 = vsel %vm710_vm9, %v706_v45, 1326507024  ;;  %v717_v54 = vsel %vm709_vm11, %v700_v41, %v716_v53  ;;  %v712_v45 = vsel %vm710_vm9, %v700_v41, 2102212464  ;;  %v691_v53 = vshrl.u32 %v1822_v15, %v690_v20 }
 0x1c7   :  { %v721_v56 = vsel %vm709_vm11, %v703_v44, %v720_v55  ;;  %v718_v59 = vsel %vm708_vm13, %v715_v46, %v717_v54 }
 0x1c8   :  { %v722_v60 = vsel %vm708_vm13, %v719_v49, %v721_v56  ;;  %v748_v2 = vand.u32 65535, %v718_v59  ;;  %v749_v5 = vshrl.u32 %v718_v59, 16 }
 0x1c9   :  { %v726_v63 = vand.u32 65535, %v722_v60  ;;  %v727_v52 = vshrl.u32 %v722_v60, 16 }
 0x1ca   :  { %v751_v1 = vmul.u32 %v749_v5, %v724_v61  ;;  %v752_v16 = vmul.u32 %v748_v2, %v725_v62  ;;  %v750_v26 = vmul.u32 %v748_v2, %v724_v61  ;;  %v753_v24 = vmul.u32 %v749_v5, %v725_v62 }
 0x1cb   :  { %v729_v7 = vmul.u32 %v727_v52, %v724_v61  ;;  %v730_v11 = vmul.u32 %v726_v63, %v725_v62  ;;  %v728_v12 = vmul.u32 %v726_v63, %v724_v61  ;;  %v731_v3 = vmul.u32 %v727_v52, %v725_v62 }
 0x1cc   :  { %v754_v27 = vshll.u32 %v751_v1, 16  ;;  %v756_v35 = vshll.u32 %v752_v16, 16  ;;  %v755_v59 = vshrl.u32 %v751_v1, 16  ;;  %v711_v61 = vsel %vm707_vm8, %v691_v53, %v694_v39 }
 0x1cd   :  { %v732_v6 = vshll.u32 %v729_v7, 16  ;;  %v734_v28 = vshll.u32 %v730_v11, 16  ;;  %v733_v55 = vshrl.u32 %v729_v7, 16  ;;  %v713_v62 = vsel %vm709_vm11, %v697_v40, %v712_v45 }
 0x1ce   :  { %vm758_vm0 = vc.u32 %v750_v26, %v754_v27  ;;  %v760_v33 = vadd.s32 %v754_v27, %v750_v26  ;;  %v735_v63 = vshrl.u32 %v730_v11, 16  ;;  %v757_v52 = vshrl.u32 %v752_v16, 16 }
 0x1cf   :  { %vm736_vm14 = vc.u32 %v728_v12, %v732_v6  ;;  %v738_v30 = vadd.s32 %v732_v6, %v728_v12  ;;  %v759_v44 = vsel %vm758_vm0, 1, %v1828_v4  ;;  %v714_v20 = vsel %vm708_vm13, %v711_v61, %v713_v62 }
 0x1d0   :  { %v737_v32 = vsel %vm736_vm14, 1, %v1828_v4  ;;  %v761_v49 = vadd.s32 %v759_v44, %v753_v24  ;;  %vm762_vm2 = vc.u32 %v760_v33, %v756_v35  ;;  %v764_v12 = vadd.s32 %v760_v33, %v756_v35 }
 0x1d1   :  { %v739_v38 = vadd.s32 %v737_v32, %v731_v3  ;;  %vm740_vm1 = vc.u32 %v738_v30, %v734_v28  ;;  %v763_v56 = vsel %vm762_vm2, 1, %v1828_v4  ;;  %v768_v1 = vmul.u32 %v2093_v13, %v714_v20 }
 0x1d2   :  { %v741_v46 = vsel %vm740_vm1, 1, %v1828_v4  ;;  %v765_v60 = vadd.s32 %v763_v56, %v761_v49  ;;  %vm677_vm11 = vcmp.lt.s32.totalorder %v2074_v0, 0  ;;  %vm676_vm13 = vcmp.le.f32.partialorder %v675_v14, 0.7853982 }
 0x1d3   :  { %v743_v54 = vadd.s32 %v741_v46, %v739_v38 }
 0x1d4   :  { %v766_v2 = vadd.s32 %v765_v60, %v755_v59 }
 0x1d5   :  { %v744_v41 = vadd.s32 %v743_v54, %v733_v55 }
 0x1d6   :  { %v767_v7 = vadd.s32 %v766_v2, %v757_v52 }
 0x1d7   :  { %v745_v5 = vadd.s32 %v744_v41, %v735_v63 }
 0x1d8   :  { %v771_v6 = vadd.s32 1, %v767_v7 }
 0x1d9   :  { %vm770_vm4 = vc.u32 %v745_v5, %v764_v12  ;;  %v769_v22 = vadd.s32 %v764_v12, %v745_v5 }
 0x1da   :  { %v772_v3 = vsel %vm770_vm4, %v771_v6, %v767_v7 }
 0x1db   :  { %v773_v26 = vadd.s32 %v772_v3, %v768_v1 }
 0x1dd   :  { %v774_v39 = vadd.s32 536870912, %v773_v26 }
 0x1df   :  { %v775_v27 = vshrl.u32 %v774_v39, 30 }
 0x1e1   :  { %v776_v28 = vshll.u32 %v775_v27, 30  ;;  %v799_v60 = vsub.s32 4, %v775_v27 }
 0x1e3   :  { %v777_v40 = vsub.s32 %v773_v26, %v776_v28  ;;  %v800_v52 = vsel %vm677_vm11, %v799_v60, %v775_v27 }
 0x1e4   :  { %v802_v12 = vsel %vm676_vm13, 0, %v800_v52 }
 0x1e5   :  { %vm778_vm8 = vcmp.lt.s32.totalorder %v777_v40, 0  ;;  %v779_v11 = vsub.s32 0, %v777_v40  ;;  %v973_v3 = vadd.s32 3, %v802_v12 }
 0x1e7   :  { %v780_v16 = vsel %vm778_vm8, %v779_v11, %v777_v40  ;;  %v974_v11 = vand.u32 3, %v973_v3 }
 0x1e8   :  { %v781_v30 = vclz %v780_v16 }
 0x1e9   :  { %vm975_vm1 = vcmp.lt.s32.totalorder %v974_v11, 2  ;;  %vm976_vm2 = vcmp.eq.s32.totalorder %v974_v11, 0  ;;  %vm979_vm4 = vcmp.eq.s32.totalorder %v974_v11, 2 }
 0x1ea   :  { %v1612_v24 = vadd.s32 4294967294, %v781_v30 }
 0x1ec   :  { %vm1613_vm9 = vcmp.lt.s32.totalorder %v1612_v24, 0 }
 0x1ed   :  { %v784_v32 = vsel %vm1613_vm9, 0, %v1612_v24  ;;  %vm818_vm9 = vweird.f32 %v2074_v0 }
 0x1ee   :  { %v785_v35 = vsub.s32 32, %v784_v32  ;;  %v789_v33 = vsub.s32 4294967266, %v784_v32  ;;  %v786_v38 = vshll.u32 %v777_v40, %v784_v32  ;;  %v819_v40 = vand.u32 3, %v802_v12 }
 0x1f0   :  { %v787_v44 = vshrl.u32 %v769_v22, %v785_v35  ;;  %v790_v45 = vadd.s32 127, %v789_v33  ;;  %vm820_vm14 = vcmp.lt.s32.totalorder %v819_v40, 2  ;;  %vm821_vm0 = vcmp.eq.s32.totalorder %v819_v40, 0 }
 0x1f1   :  { %vm824_vm8 = vcmp.eq.s32.totalorder %v819_v40, 2 }
 0x1f2   :  { %v788_v13 = vor.u32 %v787_v44, %v786_v38  ;;  %v791_v46 = vshll.u32 %v790_v45, 23 }
 0x1f4   :  { %v792_v49 = vor.u32 4788187, %v791_v46  ;;  %v795_v55 = vcvt.s32.f32 %v788_v13 }
 0x1f6   :  { %v793_v53 = vand.u32 2147483647, %v792_v49 }
 0x1f8   :  { %v796_v54 = vmul.f32 %v795_v55, %v793_v53 }
 0x1fa   :  { %v797_v56 = vxor.u32 2147483648, %v796_v54 }
 0x1fc   :  { %v798_v59 = vsel %vm677_vm11, %v797_v56, %v796_v54 }
 0x1fd   :  { %v801_v61 = vsel %vm676_vm13, %v2074_v0, %v798_v59 }
 0x1fe   :  { %v803_v62 = vmul.f32 %v801_v61, %v801_v61 }
 0x200   :  { %v804_v63 = vmul.f32 -0.001358992, %v803_v62  ;;  %v811_v41 = vmul.f32 -0.00019511016, %v803_v62 }
 0x202   :  { %v805_v2 = vadd.f32 0.041655596, %v804_v63  ;;  %v812_v5 = vadd.f32 0.008332121, %v811_v41 }
 0x204   :  { %v806_v20 = vmul.f32 %v805_v2, %v803_v62  ;;  %v813_v7 = vmul.f32 %v812_v5, %v803_v62 }
 0x206   :  { %v807_v6 = vadd.f32 -0.4999988, %v806_v20  ;;  %v814_v1 = vadd.f32 -0.16666654, %v813_v7 }
 0x208   :  { %v808_v26 = vmul.f32 %v807_v6, %v803_v62  ;;  %v815_v39 = vmul.f32 %v814_v1, %v803_v62 }
 0x20a   :  { %v809_v28 = vadd.f32 1.0, %v808_v26  ;;  %v816_v14 = vadd.f32 1.0, %v815_v39 }
 0x20c   :  { %v817_v16 = vmul.f32 %v816_v14, %v801_v61  ;;  %v825_v30 = vxor.u32 2147483648, %v809_v28 }
 0x20e   :  { %v822_v24 = vxor.u32 2147483648, %v817_v16  ;;  %v981_v32 = vsel %vm979_vm4, %v825_v30, %v817_v16  ;;  %v826_v35 = vsel %vm824_vm8, %v825_v30, %v817_v16 }
 0x210   :  { %v978_v27 = vsel %vm976_vm2, %v809_v28, %v822_v24  ;;  %v823_v22 = vsel %vm821_vm0, %v809_v28, %v822_v24 }
 0x211   :  { %v982_v33 = vsel %vm975_vm1, %v978_v27, %v981_v32  ;;  %v827_v38 = vsel %vm820_vm14, %v823_v22, %v826_v35 }
 0x212   :  { %v983_v44 = vsel %vm818_vm9, nan, %v982_v33  ;;  %v828_v45 = vsel %vm818_vm9, nan, %v827_v38 }
 0x213   :  { %987 = vst.msk [vmem:[#allocation10 + $0x2] sm:$0x3] %vm409_vm6, %v983_v44  ;;  %1617 = vmatmul.msk.f32.vlgmr.msra.gmra.mxu2 %vm412_vm5, %v983_v44  ;;  %1618 = vmatmul.msk.f32.vlgmr.msra.gmra.mxu3 %vm412_vm5, %v828_v45  ;;  %v1128_v13 = vperm.slane %v983_v44, 1  ;;  %v1107_v46 = vperm.slane %v828_v45, 1  ;;  %v1100_v49 = vperm.slane %v828_v45, 0  ;;  %v1115_v53 = vperm.slane %v983_v44, 0 }
 0x214   :  { %985 = vst.msk [vmem:[#allocation9 + $0x2] sm:$0x3] %vm409_vm6, %v828_v45  ;;  %v1114_v12 = vrot.slane %v983_v44, 1  ;;  %v1135_v20 = vrot.slane %v828_v45, 1 }
 0x215   :  { %1133 = vperm.xlu0 %1646, %v1128_v13   ;;  %1112 = vperm.xlu1 %1643, %v1107_v46  }
 0x216   :  { %1105 = vperm.xlu2 %1645, %v1100_v49   ;;  %v1116_v7 = vperm.slane %v1114_v12, 0  ;;  %v1137_v6 = vperm.slane %v1135_v20, 0 }
 0x21e   :  { %1126 = vperm.xlu2 %1645, %v1115_v53  }
 0x270   :  { %v1106_v55 = vpop.permute.xlu2 %1105 }
 0x271   :  { %v1119_v56 = vmul.f32 %v1115_v53, %v1106_v55  ;;  %v1144_v59 = vmul.f32 %v1106_v55, %v1100_v49 }
 0x278   :  { %v1127_v54 = vpop.permute.xlu2 %1126 }
 0x279   :  { %v1140_v60 = vmul.f32 %v1127_v54, %v1100_v49  ;;  %v1146_v61 = vmul.f32 %v1127_v54, %v1115_v53 }
 0x27b   :  { %v1142_v62 = vsub.f32 %v1119_v56, %v1140_v60  ;;  %v1148_v63 = vadd.f32 %v1146_v61, %v1144_v59 }
 0x27d   :  { %v1150_v41 = vmul.f32 %v1142_v62, %v1980_v31  ;;  %v1156_v52 = vmul.f32 %v1148_v63, %v1982_v50  ;;  %v1151_v53 = vmul.f32 %v1142_v62, %v2013_v36  ;;  %v1157_v55 = vmul.f32 %v1148_v63, %v2015_v37 }
 0x27e   :  { %v1152_v59 = vmul.f32 %v1142_v62, %v2028_v47  ;;  %v1158_v60 = vmul.f32 %v1148_v63, %v2030_v48 }
 0x27f   :  { %v1162_v2 = vadd.f32 %v1156_v52, %v1150_v41  ;;  %v1163_v56 = vadd.f32 %v1157_v55, %v1151_v53 }
 0x281   :  { %v1168_v5 = vsel %vm412_vm5, %v1162_v2, 0.0 }
 0x282   :  { %1169 = vadd.xlane.f32.xlu0 %v1168_v5 }
 0x287   :  { %v1134_v1 = vpop.permute.xlu0 %1133  ;;  %v1113_v3 = vpop.permute.xlu1 %1112 }
 0x288   :  { %v1141_v26 = vmul.f32 %v1137_v6, %v1134_v1  ;;  %v1147_v39 = vmul.f32 %v1134_v1, %v1116_v7  ;;  %v1120_v28 = vmul.f32 %v1116_v7, %v1113_v3  ;;  %v1145_v14 = vmul.f32 %v1137_v6, %v1113_v3 }
 0x28a   :  { %v1143_v40 = vsub.f32 %v1120_v28, %v1141_v26  ;;  %v1149_v11 = vadd.f32 %v1147_v39, %v1145_v14 }
 0x28c   :  { %v1153_v31 = vmul.f32 %v1143_v40, %v2021_v42  ;;  %v1159_v50 = vmul.f32 %v1149_v11, %v2023_v43  ;;  %v1154_v16 = vmul.f32 %v1143_v40, %v1987_v8  ;;  %v1160_v30 = vmul.f32 %v1149_v11, %v1989_v9 }
 0x28d   :  { %v1155_v24 = vmul.f32 %v1143_v40, %v2035_v57  ;;  %v1161_v27 = vmul.f32 %v1149_v11, %v2037_v58 }
 0x28e   :  { %v1165_v32 = vadd.f32 %v1159_v50, %v1153_v31  ;;  %v1166_v22 = vadd.f32 %v1160_v30, %v1154_v16 }
 0x28f   :  { %v1167_v35 = vadd.f32 %v1161_v27, %v1155_v24 }
 0x290   :  { %v1180_v36 = vsel %vm412_vm5, %v1166_v22, 0.0 }
 0x291   :  { %v1183_v61 = vsel %vm412_vm5, %v1167_v35, 0.0 }
 0x296   :  { %v1008_v33 = vpop.f32.mrf.mxu2  ;;  %v1031_v38 = vpop.f32.mrf.mxu3 }
 0x297   :  { %v1032_v44 = vadd.f32 %v1031_v38, %v1008_v33 }
 0x299   :  { %v1035_v45 = vrot.slane %v1032_v44, 1  ;;  %v1036_v13 = vperm.slane %v1032_v44, 0 }
 0x29b   :  { %v1037_v46 = vperm.slane %v1035_v45, 0  ;;  %v1040_v42 = vadd.f32 %v1036_v13, %v1994_v10  ;;  %v1171_v10 = vsel %vm412_vm5, %v1163_v56, 0.0 }
 0x29d   :  { %v1042_v43 = vmax.f32 %v1040_v42, 0.0  ;;  %v1041_v8 = vadd.f32 %v1037_v46, %v1999_v18  ;;  %v1177_v18 = vsel %vm412_vm5, %v1165_v32, 0.0 }
 0x29f   :  { %v1044_v9 = vmul.f32 %v2007_v25, %v1042_v43  ;;  %v1043_v49 = vmax.f32 %v1041_v8, 0.0 }
 0x2a1   :  { %v1046_v57 = vsel %vm474_vm7, %v1044_v9, 0.0  ;;  %v1045_v58 = vmul.f32 %v2007_v25, %v1043_v49  ;;  %v1164_v25 = vadd.f32 %v1158_v60, %v1152_v59 }
 0x2a2   :  { %1047 = vadd.xlane.f32.xlu2 %v1046_v57 }
 0x2a3   :  { %v1049_v54 = vsel %vm474_vm7, %v1045_v58, 0.0  ;;  %v1174_v37 = vsel %vm412_vm5, %v1164_v25, 0.0 }
 0x2a4   :  { %1050 = vadd.xlane.f32.xlu1 %v1049_v54 }
 0x2aa   :  { %1172 = vadd.xlane.f32.xlu2 %v1171_v10 }
 0x2ac   :  { %1178 = vadd.xlane.f32.xlu1 %v1177_v18 }
 0x2b2   :  { %1181 = vadd.xlane.f32.xlu2 %v1180_v36 }
 0x2b4   :  { %1175 = vadd.xlane.f32.xlu1 %v1174_v37 }
 0x2ba   :  { %1184 = vadd.xlane.f32.xlu2 %v1183_v61 }
 0x2f5   :  { %v1170_v39 = vpop.xlane.xlu0 %1169 }
 0x2f6   :  { %v1186_v28 = vmul.f32 2.0, %v1170_v39 }
 0x2f8   :  { %v1198_v30 = vperm.slane %v1186_v28, %v2048_v34 }
 0x315   :  { %v1048_v41 = vpop.xlane.xlu2 %1047 }
 0x316   :  { %v1052_v52 = vadd.f32 %v1048_v41, %v2043_v51 }
 0x317   :  { %v1051_v2 = vpop.xlane.xlu1 %1050 }
 0x318   :  { %v1054_v5 = vsub.f32 0.0, %v1052_v52  ;;  %v1053_v47 = vadd.f32 %v1051_v2, %v2043_v51 }
 0x31a   :  { %v1056_v62 = vmul.f32 1.442695, %v1054_v5  ;;  %v1055_v48 = vsub.f32 0.0, %v1053_v47 }
 0x31c   :  { %1657 = vpow2.f32 %v1056_v62  ;;  %v1058_v63 = vmul.f32 1.442695, %v1055_v48 }
 0x31d   :  { %v1173_v12 = vpop.xlane.xlu2 %1172 }
 0x31e   :  { %1659 = vpow2.f32 %v1058_v63  ;;  %v1187_v11 = vmul.f32 2.0, %v1173_v12 }
 0x31f   :  { %v1179_v20 = vpop.xlane.xlu1 %1178 }
 0x320   :  { %v1199_v22 = vperm.slane %v1187_v11, %v2048_v34  ;;  %v1189_v35 = vmul.f32 2.0, %v1179_v20 }
 0x322   :  { %v1658_v7 = vpop.eup %1657  ;;  %v1204_v57 = vsel %vm533_vm10, %v1199_v22, %v1198_v30  ;;  %v1201_v58 = vperm.slane %v1189_v35, %v2048_v34 }
 0x323   :  { %v1060_v6 = vadd.f32 1.0, %v1658_v7 }
 0x324   :  { %v1660_v1 = vpop.eup %1659 }
 0x325   :  { %1661 = vrcp.f32 %v1060_v6  ;;  %v1061_v3 = vadd.f32 1.0, %v1660_v1  ;;  %v1182_v26 = vpop.xlane.xlu2 %1181  ;;  %v1073_v33 = vand.u32 2147483648, %v1060_v6  ;;  %v1071_v13 = vand.u32 2147483647, %v1060_v6 }
 0x326   :  { %v1190_v32 = vmul.f32 2.0, %v1182_v26  ;;  %vm1067_vm7 = vweird.f32 %v1060_v6 }
 0x327   :  { %1663 = vrcp.f32 %v1061_v3  ;;  %v1176_v14 = vpop.xlane.xlu1 %1175  ;;  %v1086_v42 = vand.u32 2147483647, %v1061_v3  ;;  %v1088_v43 = vand.u32 2147483648, %v1061_v3  ;;  %v1074_v53 = vor.u32 1.1754944e-38, %v1073_v33 }
 0x328   :  { %v1188_v50 = vmul.f32 2.0, %v1176_v14  ;;  %v1202_v8 = vperm.slane %v1190_v32, %v2048_v34  ;;  %vm1072_vm14 = vcmp.eq.f32.partialorder %v1071_v13, 8.507059e+37  ;;  %vm1082_vm0 = vweird.f32 %v1061_v3 }
 0x329   :  { %v1089_v59 = vor.u32 1.1754944e-38, %v1088_v43  ;;  %vm1087_vm2 = vcmp.eq.f32.partialorder %v1086_v42, 8.507059e+37 }
 0x32a   :  { %v1200_v46 = vperm.slane %v1188_v50, %v2048_v34  ;;  %v1206_v60 = vsel %vm533_vm10, %v1202_v8, %v1201_v58 }
 0x32b   :  { %v1662_v40 = vpop.eup %1661 }
 0x32c   :  { %v1063_v51 = vmul.f32 %v1662_v40, %v1060_v6  ;;  %vm1068_vm5 = vweird.f32 %v1662_v40  ;;  %v1205_v18 = vsel %vm643_vm12, %v1200_v46, %v1204_v57 }
 0x32d   :  { %v1664_v31 = vpop.eup %1663  ;;  %v1185_v16 = vpop.xlane.xlu2 %1184  ;;  %vm1069_vm13 = vmor %vm1067_vm7, %vm1068_vm5 }
 0x32e   :  { %v1064_v24 = vsub.f32 1.0, %v1063_v51  ;;  %v1078_v27 = vmul.f32 %v1664_v31, %v1061_v3  ;;  %v1191_v38 = vmul.f32 2.0, %v1185_v16  ;;  %vm1083_vm11 = vweird.f32 %v1664_v31 }
 0x32f   :  { %vm1084_vm1 = vmor %vm1082_vm0, %vm1083_vm11 }
 0x330   :  { %v1079_v44 = vsub.f32 1.0, %v1078_v27  ;;  %v1065_v45 = vmul.f32 %v1662_v40, %v1064_v24  ;;  %v1203_v55 = vperm.slane %v1191_v38, %v2048_v34 }
 0x332   :  { %v1066_v9 = vadd.f32 %v1662_v40, %v1065_v45  ;;  %v1080_v49 = vmul.f32 %v1664_v31, %v1079_v44  ;;  %v1207_v61 = vsel %vm643_vm12, %v1203_v55, %v1206_v60 }
 0x334   :  { %v1070_v54 = vsel %vm1069_vm13, %v1662_v40, %v1066_v9  ;;  %v1081_v56 = vadd.f32 %v1664_v31, %v1080_v49 }
 0x335   :  { %v1075_v10 = vsel %vm1072_vm14, %v1074_v53, %v1070_v54 }
 0x336   :  { %v1210_v25 = vmul.f32 %v1205_v18, %v1075_v10  ;;  %v1085_v36 = vsel %vm1084_vm1, %v1664_v31, %v1081_v56  ;;  %v1094_v41 = vperm.slane %v1075_v10, %v2048_v34  ;;  %v1226_v14 = vperm.slane %v1075_v10, 2 }
 0x337   :  { %v1090_v37 = vsel %vm1087_vm2, %v1089_v59, %v1085_v36 }
 0x338   :  { %v1212_v52 = vsel %vm651_vm15, %v1210_v25, 0.0  ;;  %v1095_v2 = vperm.slane %v1090_v37, %v2048_v34  ;;  %v1211_v5 = vmul.f32 %v1207_v61, %v1090_v37  ;;  %v1227_v40 = vperm.slane %v1090_v37, 2 }
 0x339   :  { %v1213_v47 = vrot.slane %v1212_v52, 4 }
 0x33a   :  { %v1096_v62 = vsel %vm533_vm10, %v1095_v2, %v1094_v41  ;;  %v1219_v48 = vsel %vm651_vm15, %v1211_v5, 0.0 }
 0x33b   :  { %v1214_v63 = vadd.f32 %v1213_v47, %v1212_v52  ;;  %v1220_v12 = vrot.slane %v1219_v48, 4  ;;  %1099 = vst.msk [vmem:[#allocation12 + $0x2] sm:$0x3] %vm536_vm3, %v1096_v62 }
 0x33d   :  { %v1215_v20 = vrot.slane %v1214_v63, 2  ;;  %v1221_v7 = vadd.f32 %v1220_v12, %v1219_v48 }
 0x33f   :  { %v1216_v6 = vadd.f32 %v1215_v20, %v1214_v63  ;;  %v1222_v1 = vrot.slane %v1221_v7, 2 }
 0x341   :  { %v1217_v3 = vrot.slane %v1216_v6, 1  ;;  %v1223_v26 = vadd.f32 %v1222_v1, %v1221_v7 }
 0x343   :  { %v1218_v39 = vadd.f32 %v1217_v3, %v1216_v6  ;;  %v1224_v28 = vrot.slane %v1223_v26, 1 }
 0x345   :  { %v1225_v34 = vadd.f32 %v1224_v28, %v1223_v26  ;;  %v1228_v11 = vmul.f32 %v1226_v14, %v1218_v39 }
 0x347   :  { %v1229_v51 = vmul.f32 %v1227_v40, %v1225_v34 }
 0x349   :  { %v1232_v31 = vsel %vm533_vm10, %v1229_v51, %v1228_v11 }
 0x34a   :  { %v2183_v50 = vsub.f32 %v2074_v0, %v1232_v31 }
 0x34c   :  { %v1238_v16 = vand.u32 2139095040, %v2183_v50  ;;  %v1235_v27 = vand.u32 2147483647, %v2183_v50  ;;  %vm1237_vm0 = vcmp.lt.s32.totalorder %v2183_v50, 0 }
 0x34e   :  { %v1239_v30 = vshrl.u32 %v1238_v16, 23  ;;  %v1242_v22 = vand.u32 8388607, %v1235_v27  ;;  %vm1236_vm1 = vcmp.le.f32.partialorder %v1235_v27, 0.7853982 }
 0x350   :  { %v1619_v24 = vadd.s32 4294967169, %v1239_v30  ;;  %v1243_v44 = vor.u32 8388608, %v1242_v22 }
 0x352   :  { %v1245_v32 = vadd.s32 1, %v1619_v24  ;;  %v2201_v56 = vshll.u32 %v1243_v44, 8 }
 0x354   :  { %vm1246_vm12 = vcmp.gt.s32.totalorder %v1245_v32, 0  ;;  %v1284_v25 = vand.u32 65535, %v2201_v56  ;;  %v1285_v37 = vshrl.u32 %v2201_v56, 16 }
 0x355   :  { %v1247_v35 = vsel %vm1246_vm12, %v1245_v32, 0 }
 0x356   :  { %v1249_v33 = vand.u32 31, %v1247_v35  ;;  %v2189_v45 = vshrl.u32 %v1247_v35, 5 }
 0x358   :  { %v1250_v38 = vsub.s32 32, %v1249_v33  ;;  %v1261_v0 = vshll.u32 %v1825_v21, %v1249_v33  ;;  %v1264_v13 = vshll.u32 %v1826_v23, %v1249_v33  ;;  %v1252_v43 = vshll.u32 %v1822_v15, %v1249_v33 }
 0x359   :  { %v1255_v9 = vshll.u32 %v1823_v17, %v1249_v33  ;;  %v1258_v57 = vshll.u32 %v1824_v19, %v1249_v33  ;;  %vm1270_vm10 = vcmp.lt.s32.totalorder %v2189_v45, 4  ;;  %vm1267_vm15 = vcmp.lt.s32.totalorder %v2189_v45, 1 }
 0x35a   :  { %v1262_v46 = vshrl.u32 %v1826_v23, %v1250_v38  ;;  %v1265_v42 = vshrl.u32 %v1827_v29, %v1250_v38  ;;  %v1253_v8 = vshrl.u32 %v1823_v17, %v1250_v38  ;;  %v1256_v49 = vshrl.u32 %v1824_v19, %v1250_v38 }
 0x35b   :  { %v1259_v58 = vshrl.u32 %v1825_v21, %v1250_v38  ;;  %vm1269_vm3 = vcmp.lt.s32.totalorder %v2189_v45, 3  ;;  %vm1268_vm4 = vcmp.lt.s32.totalorder %v2189_v45, 2  ;;  %v1251_v51 = vshrl.u32 %v1822_v15, %v1250_v38 }
 0x35c   :  { %v1263_v53 = vor.u32 %v1262_v46, %v1261_v0  ;;  %v1266_v55 = vor.u32 %v1265_v42, %v1264_v13  ;;  %v1254_v54 = vor.u32 %v1253_v8, %v1252_v43  ;;  %v1257_v23 = vor.u32 %v1256_v49, %v1255_v9 }
 0x35d   :  { %v1260_v29 = vor.u32 %v1259_v58, %v1258_v57 }
 0x35e   :  { %v1276_v10 = vsel %vm1270_vm10, %v1263_v53, 920167782  ;;  %v1280_v17 = vsel %vm1270_vm10, %v1266_v55, 1326507024  ;;  %v1275_v19 = vsel %vm1267_vm15, %v1254_v54, %v1257_v23  ;;  %v1271_v22 = vsel %vm1267_vm15, %v1251_v51, %v1254_v54 }
 0x35f   :  { %v1277_v21 = vsel %vm1269_vm3, %v1260_v29, %v1276_v10  ;;  %v1279_v18 = vsel %vm1267_vm15, %v1257_v23, %v1260_v29  ;;  %v1281_v60 = vsel %vm1269_vm3, %v1263_v53, %v1280_v17  ;;  %v1272_v34 = vsel %vm1270_vm10, %v1260_v29, 2102212464 }
 0x360   :  { %v1278_v59 = vsel %vm1268_vm4, %v1275_v19, %v1277_v21  ;;  %v1282_v36 = vsel %vm1268_vm4, %v1279_v18, %v1281_v60  ;;  %v1273_v35 = vsel %vm1269_vm3, %v1257_v23, %v1272_v34 }
 0x361   :  { %v1308_v61 = vand.u32 65535, %v1278_v59  ;;  %v1309_v41 = vshrl.u32 %v1278_v59, 16  ;;  %v1286_v52 = vand.u32 65535, %v1282_v36  ;;  %v1287_v2 = vshrl.u32 %v1282_v36, 16 }
 0x362   :  { %v1274_v38 = vsel %vm1268_vm4, %v1271_v22, %v1273_v35 }
 0x363   :  { %v1311_v5 = vmul.u32 %v1309_v41, %v1284_v25  ;;  %v1312_v47 = vmul.u32 %v1308_v61, %v1285_v37  ;;  %v1289_v62 = vmul.u32 %v1287_v2, %v1284_v25  ;;  %v1290_v48 = vmul.u32 %v1286_v52, %v1285_v37 }
 0x364   :  { %v1310_v63 = vmul.u32 %v1308_v61, %v1284_v25  ;;  %v1288_v20 = vmul.u32 %v1286_v52, %v1284_v25  ;;  %v1313_v6 = vmul.u32 %v1309_v41, %v1285_v37  ;;  %v1291_v1 = vmul.u32 %v1287_v2, %v1285_v37 }
 0x365   :  { %v1314_v12 = vshll.u32 %v1311_v5, 16  ;;  %v1292_v7 = vshll.u32 %v1289_v62, 16  ;;  %v1316_v3 = vshll.u32 %v1312_v47, 16  ;;  %v1294_v39 = vshll.u32 %v1290_v48, 16 }
 0x366   :  { %v1315_v24 = vshrl.u32 %v1311_v5, 16  ;;  %v1293_v33 = vshrl.u32 %v1289_v62, 16  ;;  %v1317_v0 = vshrl.u32 %v1312_v47, 16  ;;  %v1295_v46 = vshrl.u32 %v1290_v48, 16 }
 0x367   :  { %vm1318_vm8 = vc.u32 %v1310_v63, %v1314_v12  ;;  %v1320_v26 = vadd.s32 %v1314_v12, %v1310_v63  ;;  %vm1296_vm9 = vc.u32 %v1288_v20, %v1292_v7  ;;  %v1298_v28 = vadd.s32 %v1292_v7, %v1288_v20 }
 0x368   :  { %v1319_v14 = vsel %vm1318_vm8, 1, %v1828_v4  ;;  %v1297_v40 = vsel %vm1296_vm9, 1, %v1828_v4  ;;  %v1328_v9 = vmul.u32 %v2201_v56, %v1274_v38  ;;  %vm1378_vm8 = vweird.f32 %v2183_v50 }
 0x369   :  { %v1321_v11 = vadd.s32 %v1319_v14, %v1313_v6  ;;  %vm1322_vm5 = vc.u32 %v1320_v26, %v1316_v3  ;;  %v1299_v31 = vadd.s32 %v1297_v40, %v1291_v1  ;;  %vm1300_vm7 = vc.u32 %v1298_v28, %v1294_v39 }
 0x36a   :  { %v1323_v16 = vsel %vm1322_vm5, 1, %v1828_v4  ;;  %v1301_v30 = vsel %vm1300_vm7, 1, %v1828_v4  ;;  %v1324_v4 = vadd.s32 %v1320_v26, %v1316_v3 }
 0x36b   :  { %v1325_v32 = vadd.s32 %v1323_v16, %v1321_v11  ;;  %v1303_v44 = vadd.s32 %v1301_v30, %v1299_v31 }
 0x36d   :  { %v1326_v13 = vadd.s32 %v1325_v32, %v1315_v24  ;;  %v1304_v15 = vadd.s32 %v1303_v44, %v1293_v33 }
 0x36f   :  { %v1327_v42 = vadd.s32 %v1326_v13, %v1317_v0  ;;  %v1305_v43 = vadd.s32 %v1304_v15, %v1295_v46 }
 0x371   :  { %v1331_v8 = vadd.s32 1, %v1327_v42  ;;  %vm1330_vm11 = vc.u32 %v1305_v43, %v1324_v4  ;;  %v1329_v19 = vadd.s32 %v1324_v4, %v1305_v43 }
 0x373   :  { %v1332_v49 = vsel %vm1330_vm11, %v1331_v8, %v1327_v42 }
 0x374   :  { %v1333_v57 = vadd.s32 %v1332_v49, %v1328_v9 }
 0x376   :  { %v1334_v58 = vadd.s32 536870912, %v1333_v57 }
 0x378   :  { %v1335_v53 = vshrl.u32 %v1334_v58, 30 }
 0x37a   :  { %v1336_v55 = vshll.u32 %v1335_v53, 30  ;;  %v1359_v47 = vsub.s32 4, %v1335_v53 }
 0x37c   :  { %v1337_v54 = vsub.s32 %v1333_v57, %v1336_v55  ;;  %v1360_v20 = vsel %vm1237_vm0, %v1359_v47, %v1335_v53 }
 0x37d   :  { %v1362_v1 = vsel %vm1236_vm1, 0, %v1360_v20 }
 0x37e   :  { %vm1338_vm13 = vcmp.lt.s32.totalorder %v1337_v54, 0  ;;  %v1339_v23 = vsub.s32 0, %v1337_v54  ;;  %v1535_v14 = vadd.s32 3, %v1362_v1  ;;  %v1379_v51 = vand.u32 3, %v1362_v1 }
 0x380   :  { %v1340_v29 = vsel %vm1338_vm13, %v1339_v23, %v1337_v54  ;;  %v1536_v31 = vand.u32 3, %v1535_v14  ;;  %vm1380_vm2 = vcmp.lt.s32.totalorder %v1379_v51, 2  ;;  %vm1381_vm12 = vcmp.eq.s32.totalorder %v1379_v51, 0 }
 0x381   :  { %v1341_v10 = vclz %v1340_v29  ;;  %vm1384_vm4 = vcmp.eq.s32.totalorder %v1379_v51, 2 }
 0x382   :  { %vm1537_vm10 = vcmp.lt.s32.totalorder %v1536_v31, 2  ;;  %vm1538_vm15 = vcmp.eq.s32.totalorder %v1536_v31, 0  ;;  %vm1541_vm3 = vcmp.eq.s32.totalorder %v1536_v31, 2 }
 0x383   :  { %v1620_v17 = vadd.s32 4294967294, %v1341_v10 }
 0x385   :  { %vm1621_vm14 = vcmp.lt.s32.totalorder %v1620_v17, 0 }
 0x386   :  { %v1344_v45 = vsel %vm1621_vm14, 0, %v1620_v17 }
 0x387   :  { %v1345_v21 = vsub.s32 32, %v1344_v45  ;;  %v1349_v18 = vsub.s32 4294967266, %v1344_v45  ;;  %v1346_v59 = vshll.u32 %v1337_v54, %v1344_v45 }
 0x389   :  { %v1347_v60 = vshrl.u32 %v1329_v19, %v1345_v21  ;;  %v1350_v56 = vadd.s32 127, %v1349_v18 }
 0x38b   :  { %v1348_v25 = vor.u32 %v1347_v60, %v1346_v59  ;;  %v1351_v36 = vshll.u32 %v1350_v56, 23 }
 0x38d   :  { %v1352_v37 = vor.u32 4788187, %v1351_v36  ;;  %v1355_v41 = vcvt.s32.f32 %v1348_v25 }
 0x38f   :  { %v1353_v61 = vand.u32 2147483647, %v1352_v37 }
 0x391   :  { %v1356_v52 = vmul.f32 %v1355_v41, %v1353_v61 }
 0x393   :  { %v1357_v2 = vxor.u32 2147483648, %v1356_v52 }
 0x395   :  { %v1358_v5 = vsel %vm1237_vm0, %v1357_v2, %v1356_v52 }
 0x396   :  { %v1361_v62 = vsel %vm1236_vm1, %v2183_v50, %v1358_v5 }
 0x397   :  { %v1363_v48 = vmul.f32 %v1361_v62, %v1361_v62 }
 0x399   :  { %v1364_v63 = vmul.f32 -0.001358992, %v1363_v48  ;;  %v1371_v12 = vmul.f32 -0.00019511016, %v1363_v48 }
 0x39b   :  { %v1365_v7 = vadd.f32 0.041655596, %v1364_v63  ;;  %v1372_v6 = vadd.f32 0.008332121, %v1371_v12 }
 0x39d   :  { %v1366_v3 = vmul.f32 %v1365_v7, %v1363_v48  ;;  %v1373_v26 = vmul.f32 %v1372_v6, %v1363_v48 }
 0x39f   :  { %v1367_v39 = vadd.f32 -0.4999988, %v1366_v3  ;;  %v1374_v28 = vadd.f32 -0.16666654, %v1373_v26 }
 0x3a1   :  { %v1368_v34 = vmul.f32 %v1367_v39, %v1363_v48  ;;  %v1375_v40 = vmul.f32 %v1374_v28, %v1363_v48 }
 0x3a3   :  { %v1369_v11 = vadd.f32 1.0, %v1368_v34  ;;  %v1376_v27 = vadd.f32 1.0, %v1375_v40 }
 0x3a5   :  { %v1377_v16 = vmul.f32 %v1376_v27, %v1361_v62  ;;  %v1385_v30 = vxor.u32 2147483648, %v1369_v11 }
 0x3a7   :  { %v1382_v24 = vxor.u32 2147483648, %v1377_v16  ;;  %v1543_v22 = vsel %vm1541_vm3, %v1385_v30, %v1377_v16  ;;  %v1386_v33 = vsel %vm1384_vm4, %v1385_v30, %v1377_v16 }
 0x3a9   :  { %v1540_v32 = vsel %vm1538_vm15, %v1369_v11, %v1382_v24  ;;  %v1383_v35 = vsel %vm1381_vm12, %v1369_v11, %v1382_v24 }
 0x3aa   :  { %v1544_v44 = vsel %vm1537_vm10, %v1540_v32, %v1543_v22  ;;  %v1387_v0 = vsel %vm1380_vm2, %v1383_v35, %v1386_v33 }
 0x3ab   :  { %v1545_v13 = vsel %vm1378_vm8, nan, %v1544_v44  ;;  %v1388_v46 = vsel %vm1378_vm8, nan, %v1387_v0 }
 0x3ac   :  { %1547 = vst.msk [vmem:[#allocation10 + $0x4] sm:$0x3] %vm409_vm6, %v1545_v13 }
 0x3ad   :  { %1573 = dma.vmem_to_hbm [thread:$0]  %s1566_s6, 96, %s1568_s18, [#allocation11], %s1832_s8, %s1832_s8, %s1833_s27   ;;  %1390 = vst.msk [vmem:[#allocation9 + $0x4] sm:$0x3] %vm409_vm6, %v1388_v46 }
 0x3ae   :  { %1560 = dma.vmem_to_hbm [thread:$0]  %s1553_s20, 96, %s1555_s23, [#allocation5], %s1832_s8, %s1832_s8, %s1833_s27  }
 0x3af   :  { %1586 = dma.vmem_to_hbm [thread:$0]  %s1579_s24, 64, %s1581_s26, [#allocation11], %s1832_s8, %s1832_s8, %s1833_s27  }
 0x3b0   :  { %1813 = dma.done.wait [#allocation5], 96  }
 0x3b1   :  { %1814 = vsyncadd [#allocation5], 4294967200 }
 0x3b2   :  { %1815 = dma.done.wait [#allocation11], 160  }
 0x3b3   :  { %1816 = vsyncadd [#allocation11], 4294967136 }
 0x3b4   :  { %1599 = vsyncpa [#allocation4], 1 }
 0x3b5   :  { %1600 = vsyncpa [#allocation7], 1 }
 0x3b6   :  { %1601 = vsyncpa [#allocation5], 1 }
 0x3b7   :  { %1602 = vsyncpa [#allocation11], 1 }

</bundles_post_ra>
